<compile_context>
chip_gen: v5e
topology: v5e:2x2
jax: 0.10.0
libtpu: 0.0.40
codegen_flags: <defaults>
</compile_context>

<pallas_src>
import functools

import jax
import jax.numpy as jnp
from jax.experimental import pallas as pl
from jax.experimental.pallas import tpu as pltpu

NEG_SLOPE = 0.01  # F.leaky_relu default negative_slope
LANE = 128


def _lrelu(x):
    return jnp.where(x > 0, x, NEG_SLOPE * x)


# --------------------------------------------------------------------------- #
# Fused kernel: embedding gather + CSM/CM convs + LSTM + decoder                #
# --------------------------------------------------------------------------- #
def fused_kernel(wid_ref, sid_ref, emb_ref, convp_ref,
                 wihw_ref, wihu_ref, whh_ref, b_ref,
                 wdec_ref, bdec_ref, h0_ref, c0_ref,
                 y_ref, hn_ref, cn_ref,
                 *, n_lines, line_len, hidden, seq_len, batch, vocab):
    H, B, T, S2, S3, V = hidden, batch, seq_len, n_lines, line_len, vocab
    emb = emb_ref[...]                                       # (V, H) f32

    # ---------------- embedding gathers (one-hot @ table; exact) -------------
    TB = T * B
    iota_w = jax.lax.broadcasted_iota(jnp.int32, (TB, V), 1)
    onehot_w = (iota_w == wid_ref[...]).astype(jnp.float32)  # (TB, V)
    word_tm = jnp.dot(onehot_w, emb,
                      preferred_element_type=jnp.float32)    # (TB, H) time-major

    NS = B * S2 * S3
    iota_s = jax.lax.broadcasted_iota(jnp.int32, (NS, V), 1)
    onehot_s = (iota_s == sid_ref[...]).astype(jnp.float32)  # (NS, V)
    sent = jnp.dot(onehot_s, emb,
                   preferred_element_type=jnp.float32)       # (NS, H)

    # ---------------- CSM: Conv3d(1,1,(1,k,1)) stack + leaky_relu -------------
    # scalar-tap convs along the char axis; processed per (batch, line) slab to
    # stay 2-D (no in-kernel 4-D reshapes).  Dropout2d == identity (eval).
    csm_ksizes = [2, 2, 3] + ([3] if S3 == 7 else [])
    lines = [sent[g * S3:(g + 1) * S3, :] for g in range(B * S2)]   # (S3, H) each
    for layer, k in enumerate(csm_ksizes):
        new_lines = []
        for slab in lines:
            L = slab.shape[0]
            Lo = L - k + 1
            acc = convp_ref[layer, 0] * slab[0:Lo, :]
            for tap in range(1, k):
                acc = acc + convp_ref[layer, tap] * slab[tap:tap + Lo, :]
            new_lines.append(_lrelu(acc + convp_ref[layer, 3]))
        lines = new_lines
    # each slab is now (1, H)  (the torch assert: char axis collapsed to 1)

    # ---------------- CM: Conv2d(1,1,(n_lines,1)) over the line axis ----------
    if S2 > 1:
        row = 4 if S2 == 2 else 5                            # cm_21 vs cm_31
        us = []
        for b in range(B):
            acc = convp_ref[row, 0] * lines[b * S2 + 0]
            for line in range(1, S2):
                acc = acc + convp_ref[row, line] * lines[b * S2 + line]
            us.append(_lrelu(acc + convp_ref[row, 3]))
        u = jnp.concatenate(us, axis=0)                      # (B, H)
    else:
        u = jnp.concatenate(lines, axis=0)                   # (B, H) — torch: u = v

    # ---------------- LSTM (batch_first, num_layers=1) -----------------------
    # torch.cat([word, u.repeat(1,T,1)], 2) @ W_ih^T is a split matmul: the word
    # half is batched over all timesteps in ONE matmul; the u-contribution and
    # biases are pre-folded per timestep OUTSIDE the recurrence.
    gx = jnp.dot(word_tm, wihw_ref[...],
                 preferred_element_type=jnp.float32)         # (TB, 4H)
    ug = (jnp.dot(u, wihu_ref[...], preferred_element_type=jnp.float32)
          + b_ref[...])                                      # (B, 4H)
    pre = [gx[t * B:(t + 1) * B, :] + ug for t in range(T)]  # off the serial path

    whh = whh_ref[...]                                       # (H, 4H), hoisted
    h = h0_ref[...]                                          # (B, H)
    c = c0_ref[...]                                          # (B, H)
    hs = []
    for t in range(T):                                       # static unroll (T small)
        gates = pre[t] + jnp.dot(h, whh,
                                 preferred_element_type=jnp.float32)  # (B,4H) i,f,o,g
        s = jax.nn.sigmoid(gates[:, :3 * H])                 # one EUP pass for i,f,o
        g = jnp.tanh(gates[:, 3 * H:])
        c = s[:, H:2 * H] * c + s[:, :H] * g
        h = s[:, 2 * H:3 * H] * jnp.tanh(c)
        hs.append(h)
    hn_ref[...] = h
    cn_ref[...] = c

    # ---------------- fused decoder Linear(H, V_pad) --------------------------
    # rows reordered to PyTorch's (b*T + t) layout before one lane-dense matmul.
    h_bt = jnp.concatenate([hs[t][b:b + 1, :] for b in range(B) for t in range(T)],
                           axis=0)                           # (B*T, H)
    y_ref[...] = (jnp.dot(h_bt, wdec_ref[...],
                          preferred_element_type=jnp.float32)
                  + bdec_ref[...])                           # (B*T, V_pad)


# --------------------------------------------------------------------------- #
# One-time parameter preparation (outside the per-step forward)                 #
# --------------------------------------------------------------------------- #
def prepare_params(params):
    H = params["w_hh"].shape[1]
    V = params["dec_w"].shape[0]
    V_pad = ((V + LANE - 1) // LANE) * LANE

    def perm_gate_rows(w):                                   # torch [i,f,g,o] -> [i,f,o,g]
        i, f, g, o = jnp.split(w, 4, axis=0)
        return jnp.concatenate([i, f, o, g], axis=0)

    wih = perm_gate_rows(params["w_ih"].astype(jnp.float32))           # (4H, 2H)
    whh = perm_gate_rows(params["w_hh"].astype(jnp.float32))           # (4H, H)
    b_comb = perm_gate_rows((params["b_ih"] + params["b_hh"])
                            .astype(jnp.float32).reshape(4 * H, 1)).reshape(1, 4 * H)

    # pack scalar conv taps/biases into one SMEM table:
    # rows [csm_l1, csm_l2, csm_l3, csm_l4, cm_21, cm_31]; cols [w0, w1, w2, bias]
    convp = jnp.zeros((6, 4), jnp.float32)
    convp = convp.at[0, 0:2].set(params["csm1_w"]).at[0, 3].set(params["csm1_b"])
    convp = convp.at[1, 0:2].set(params["csm2_w"]).at[1, 3].set(params["csm2_b"])
    convp = convp.at[2, 0:3].set(params["csm3_w"]).at[2, 3].set(params["csm3_b"])
    convp = convp.at[3, 0:3].set(params["csm4_w"]).at[3, 3].set(params["csm4_b"])
    convp = convp.at[4, 0:2].set(params["cm21_w"]).at[4, 3].set(params["cm21_b"])
    convp = convp.at[5, 0:3].set(params["cm31_w"]).at[5, 3].set(params["cm31_b"])

    wdec = jnp.pad(params["dec_w"].astype(jnp.float32).T, ((0, 0), (0, V_pad - V)))
    bdec = jnp.pad(params["dec_b"].astype(jnp.float32), (0, V_pad - V)).reshape(1, V_pad)

    return dict(
        emb=params["embedding"].astype(jnp.float32),         # (V, H)
        convp=convp,                                         # (6, 4)  SMEM
        wih_w=wih[:, :H].T,                                  # (H, 4H) word half
        wih_u=wih[:, H:].T,                                  # (H, 4H) u half
        whh=whh.T,                                           # (H, 4H)
        b=b_comb,                                            # (1, 4H)
        wdec=wdec,                                           # (H, V_pad)
        bdec=bdec,                                           # (1, V_pad)
    )


# --------------------------------------------------------------------------- #
# Forward wrapper                                                               #
# --------------------------------------------------------------------------- #
def poetry_generator_forward(prep, word_ids, sentence_ids, hidden):
    """Mirrors PoetryGenerator.forward(word, sentence, hidden) (LSTM variant)."""
    B, T = word_ids.shape
    _, S2, S3 = sentence_ids.shape
    V, H = prep["emb"].shape
    V_pad = prep["wdec"].shape[1]

    # static checks mirroring the torch assert (CSM must collapse the char axis to 1)
    csm_ksizes = [2, 2, 3] + ([3] if S3 == 7 else [])
    assert S3 - sum(k - 1 for k in csm_ksizes) == 1, "CSM must collapse line_len to 1"
    assert S2 in (1, 2, 3), "CM conv only defined for 1..3 previous lines"

    # tiny integer-only glue: time-major word ids, flat sentence ids
    wid_tm = jnp.transpose(word_ids, (1, 0)).reshape(T * B, 1).astype(jnp.int32)
    sid = sentence_ids.reshape(B * S2 * S3, 1).astype(jnp.int32)

    h0, c0 = hidden                                          # each (1, B, H)
    h0 = h0[0].astype(jnp.float32)
    c0 = c0[0].astype(jnp.float32)

    kernel = functools.partial(fused_kernel, n_lines=S2, line_len=S3, hidden=H,
                               seq_len=T, batch=B, vocab=V)

    vmem = pl.BlockSpec(memory_space=pltpu.MemorySpace.VMEM)
    smem = pl.BlockSpec(memory_space=pltpu.MemorySpace.SMEM)

    flops = 2 * (T * B * V * H + B * S2 * S3 * V * H
                 + T * B * H * 4 * H + B * H * 4 * H
                 + T * B * H * 4 * H + B * T * H * V_pad)
    bytes_accessed = 4 * (wid_tm.size + sid.size + V * H + 24
                          + 3 * H * 4 * H + 4 * H + H * V_pad + V_pad
                          + 4 * B * H + B * T * V_pad)
    cost = pl.CostEstimate(flops=flops, transcendentals=5 * T * B * H,
                           bytes_accessed=bytes_accessed)

    y_pad, h_n, c_n = pl.pallas_call(
        kernel,
        out_shape=(jax.ShapeDtypeStruct((B * T, V_pad), jnp.float32),
                   jax.ShapeDtypeStruct((B, H), jnp.float32),
                   jax.ShapeDtypeStruct((B, H), jnp.float32)),
        in_specs=[vmem, vmem, vmem, smem,           # ids, ids, emb, conv table
                  vmem, vmem, vmem, vmem,           # wih_w, wih_u, whh, b
                  vmem, vmem, vmem, vmem],          # wdec, bdec, h0, c0
        out_specs=(vmem, vmem, vmem),
        cost_estimate=cost,
    )(wid_tm, sid, prep["emb"], prep["convp"],
      prep["wih_w"], prep["wih_u"], prep["whh"], prep["b"],
      prep["wdec"], prep["bdec"], h0, c0)

    y = y_pad[:, :V]                                         # drop vocab padding
    return y, (h_n[None], c_n[None])


def init_params(key, vocab_size, hidden):
    """Deterministic synthetic parameters with the same shapes as the module."""
    ks = jax.random.split(key, 24)
    n = lambda k, shape, s=0.1: (s * jax.random.normal(k, shape)).astype(jnp.float32)
    return dict(
        embedding=n(ks[0], (vocab_size, hidden), 1.0),       # nn.Embedding(vocab, H)
        csm1_w=n(ks[1], (2,)), csm1_b=n(ks[2], ()),          # Conv3d(1,1,(1,2,1))
        csm2_w=n(ks[3], (2,)), csm2_b=n(ks[4], ()),          # Conv3d(1,1,(1,2,1))
        csm3_w=n(ks[5], (3,)), csm3_b=n(ks[6], ()),          # Conv3d(1,1,(1,3,1))
        csm4_w=n(ks[7], (3,)), csm4_b=n(ks[8], ()),          # Conv3d(1,1,(1,3,1))
        cm21_w=n(ks[9], (2,)), cm21_b=n(ks[10], ()),         # Conv2d(1,1,(2,1))
        cm31_w=n(ks[11], (3,)), cm31_b=n(ks[12], ()),        # Conv2d(1,1,(3,1))
        w_ih=n(ks[13], (4 * hidden, 2 * hidden)),            # LSTM weight_ih_l0
        w_hh=n(ks[14], (4 * hidden, hidden)),                # LSTM weight_hh_l0
        b_ih=n(ks[15], (4 * hidden,)),
        b_hh=n(ks[16], (4 * hidden,)),
        dec_w=n(ks[17], (vocab_size, hidden)),               # Linear(H, vocab)
        dec_b=n(ks[18], (vocab_size,)),
    )


if __name__ == "__main__":
    VOCAB, HIDDEN = 64, 32      # embedding_dim == rnn_hidden_size (forward implies it)
    B, T = 2, 8                 # batch, word sequence length
    S2, S3 = 2, 5               # previous lines, chars per line (5 -> csm_l4 skipped)

    key = jax.random.PRNGKey(0)
    kp, kw, ks = jax.random.split(key, 3)
    params = init_params(kp, VOCAB, HIDDEN)
    prep = prepare_params(params)                            # one-time weight prep

    word_ids = jax.random.randint(kw, (B, T), 0, VOCAB, dtype=jnp.int32)
    sentence_ids = jax.random.randint(ks, (B, S2, S3), 0, VOCAB, dtype=jnp.int32)
    hidden0 = (jnp.zeros((1, B, HIDDEN), jnp.float32),       # init_hidden (LSTM)
               jnp.zeros((1, B, HIDDEN), jnp.float32))

    fwd = jax.jit(poetry_generator_forward)
    y, (h_n, c_n) = fwd(prep, word_ids, sentence_ids, hidden0)
    jax.block_until_ready((y, h_n, c_n))
    assert y.shape == (B * T, VOCAB)
    assert h_n.shape == (1, B, HIDDEN) and c_n.shape == (1, B, HIDDEN)
    print("KERNEL_OK")
</pallas_src>

<mosaic_0001>
module attributes {stable_mosaic.version = 11 : i64} {
  func.func @fused_kernel(%arg0: memref<16x1xi32, #tpu.memory_space<vmem>>, %arg1: memref<20x1xi32, #tpu.memory_space<vmem>>, %arg2: memref<64x32xf32, #tpu.memory_space<vmem>>, %arg3: memref<6x4xf32, #tpu.memory_space<smem>>, %arg4: memref<32x128xf32, #tpu.memory_space<vmem>>, %arg5: memref<32x128xf32, #tpu.memory_space<vmem>>, %arg6: memref<32x128xf32, #tpu.memory_space<vmem>>, %arg7: memref<1x128xf32, #tpu.memory_space<vmem>>, %arg8: memref<32x128xf32, #tpu.memory_space<vmem>>, %arg9: memref<1x128xf32, #tpu.memory_space<vmem>>, %arg10: memref<2x32xf32, #tpu.memory_space<vmem>>, %arg11: memref<2x32xf32, #tpu.memory_space<vmem>>, %arg12: memref<16x128xf32, #tpu.memory_space<vmem>>, %arg13: memref<2x32xf32, #tpu.memory_space<vmem>>, %arg14: memref<2x32xf32, #tpu.memory_space<vmem>>) attributes {dimension_semantics = [], scalar_prefetch = 0 : i64, scratch_operands = 0 : i64, tpu.core_type = #tpu.core_type<tc>} {
    %c0 = arith.constant 0 : index
    %c0_0 = arith.constant 0 : index
    %0 = vector.load %arg2[%c0, %c0_0] : memref<64x32xf32, #tpu.memory_space<vmem>>, vector<64x32xf32>
    %1 = tpu.iota {dimensions = array<i32: 1>} : vector<16x64xi32>
    %c0_1 = arith.constant 0 : index
    %c0_2 = arith.constant 0 : index
    %2 = vector.load %arg0[%c0_1, %c0_2] : memref<16x1xi32, #tpu.memory_space<vmem>>, vector<16x1xi32>
    %3 = vector.broadcast %2 : vector<16x1xi32> to vector<16x64xi32>
    %4 = arith.cmpi eq, %1, %3 : vector<16x64xi32>
    %5 = arith.extui %4 : vector<16x64xi1> to vector<16x64xi32>
    %6 = arith.sitofp %5 : vector<16x64xi32> to vector<16x64xf32>
    %cst = arith.constant dense<0.000000e+00> : vector<16x32xf32>
    %7 = tpu.matmul %6, %0, %cst {dimension_numbers = #tpu.dot_dimension_numbers<[1], [0], [0], [1], [0, 0, 1, 1], [], []>} : vector<16x64xf32>, vector<64x32xf32>, vector<16x32xf32> -> vector<16x32xf32>
    %8 = tpu.iota {dimensions = array<i32: 1>} : vector<20x64xi32>
    %c0_3 = arith.constant 0 : index
    %c0_4 = arith.constant 0 : index
    %9 = vector.load %arg1[%c0_3, %c0_4] : memref<20x1xi32, #tpu.memory_space<vmem>>, vector<20x1xi32>
    %10 = vector.broadcast %9 : vector<20x1xi32> to vector<20x64xi32>
    %11 = arith.cmpi eq, %8, %10 : vector<20x64xi32>
    %12 = arith.extui %11 : vector<20x64xi1> to vector<20x64xi32>
    %13 = arith.sitofp %12 : vector<20x64xi32> to vector<20x64xf32>
    %cst_5 = arith.constant dense<0.000000e+00> : vector<20x32xf32>
    %14 = tpu.matmul %13, %0, %cst_5 {dimension_numbers = #tpu.dot_dimension_numbers<[1], [0], [0], [1], [0, 0, 1, 1], [], []>} : vector<20x64xf32>, vector<64x32xf32>, vector<20x32xf32> -> vector<20x32xf32>
    %15 = vector.extract_strided_slice %14 {offsets = [0, 0], sizes = [5, 32], strides = [1, 1]} : vector<20x32xf32> to vector<5x32xf32>
    %16 = vector.extract_strided_slice %14 {offsets = [5, 0], sizes = [5, 32], strides = [1, 1]} : vector<20x32xf32> to vector<5x32xf32>
    %17 = vector.extract_strided_slice %14 {offsets = [10, 0], sizes = [5, 32], strides = [1, 1]} : vector<20x32xf32> to vector<5x32xf32>
    %18 = vector.extract_strided_slice %14 {offsets = [15, 0], sizes = [5, 32], strides = [1, 1]} : vector<20x32xf32> to vector<5x32xf32>
    %c0_6 = arith.constant 0 : index
    %c0_7 = arith.constant 0 : index
    %19 = memref.load %arg3[%c0_6, %c0_7] : memref<6x4xf32, #tpu.memory_space<smem>>
    %20 = vector.extract_strided_slice %15 {offsets = [0, 0], sizes = [4, 32], strides = [1, 1]} : vector<5x32xf32> to vector<4x32xf32>
    %21 = vector.broadcast %19 : f32 to vector<4x32xf32>
    %22 = arith.mulf %21, %20 : vector<4x32xf32>
    %c0_8 = arith.constant 0 : index
    %c1 = arith.constant 1 : index
    %23 = memref.load %arg3[%c0_8, %c1] : memref<6x4xf32, #tpu.memory_space<smem>>
    %24 = vector.extract_strided_slice %15 {offsets = [1, 0], sizes = [4, 32], strides = [1, 1]} : vector<5x32xf32> to vector<4x32xf32>
    %25 = vector.broadcast %23 : f32 to vector<4x32xf32>
    %26 = arith.mulf %25, %24 : vector<4x32xf32>
    %27 = arith.addf %22, %26 : vector<4x32xf32>
    %c0_9 = arith.constant 0 : index
    %c3 = arith.constant 3 : index
    %28 = memref.load %arg3[%c0_9, %c3] : memref<6x4xf32, #tpu.memory_space<smem>>
    %29 = vector.broadcast %28 : f32 to vector<4x32xf32>
    %30 = arith.addf %27, %29 : vector<4x32xf32>
    %cst_10 = arith.constant 0.000000e+00 : f32
    %31 = vector.broadcast %cst_10 : f32 to vector<4x32xf32>
    %32 = arith.cmpf ogt, %30, %31 : vector<4x32xf32>
    %cst_11 = arith.constant 0.00999999977 : f32
    %33 = vector.broadcast %cst_11 : f32 to vector<4x32xf32>
    %34 = arith.mulf %33, %30 : vector<4x32xf32>
    %35 = arith.select %32, %30, %34 : vector<4x32xi1>, vector<4x32xf32>
    %c0_12 = arith.constant 0 : index
    %c0_13 = arith.constant 0 : index
    %36 = memref.load %arg3[%c0_12, %c0_13] : memref<6x4xf32, #tpu.memory_space<smem>>
    %37 = vector.extract_strided_slice %16 {offsets = [0, 0], sizes = [4, 32], strides = [1, 1]} : vector<5x32xf32> to vector<4x32xf32>
    %38 = vector.broadcast %36 : f32 to vector<4x32xf32>
    %39 = arith.mulf %38, %37 : vector<4x32xf32>
    %c0_14 = arith.constant 0 : index
    %c1_15 = arith.constant 1 : index
    %40 = memref.load %arg3[%c0_14, %c1_15] : memref<6x4xf32, #tpu.memory_space<smem>>
    %41 = vector.extract_strided_slice %16 {offsets = [1, 0], sizes = [4, 32], strides = [1, 1]} : vector<5x32xf32> to vector<4x32xf32>
    %42 = vector.broadcast %40 : f32 to vector<4x32xf32>
    %43 = arith.mulf %42, %41 : vector<4x32xf32>
    %44 = arith.addf %39, %43 : vector<4x32xf32>
    %c0_16 = arith.constant 0 : index
    %c3_17 = arith.constant 3 : index
    %45 = memref.load %arg3[%c0_16, %c3_17] : memref<6x4xf32, #tpu.memory_space<smem>>
    %46 = vector.broadcast %45 : f32 to vector<4x32xf32>
    %47 = arith.addf %44, %46 : vector<4x32xf32>
    %cst_18 = arith.constant 0.000000e+00 : f32
    %48 = vector.broadcast %cst_18 : f32 to vector<4x32xf32>
    %49 = arith.cmpf ogt, %47, %48 : vector<4x32xf32>
    %cst_19 = arith.constant 0.00999999977 : f32
    %50 = vector.broadcast %cst_19 : f32 to vector<4x32xf32>
    %51 = arith.mulf %50, %47 : vector<4x32xf32>
    %52 = arith.select %49, %47, %51 : vector<4x32xi1>, vector<4x32xf32>
    %c0_20 = arith.constant 0 : index
    %c0_21 = arith.constant 0 : index
    %53 = memref.load %arg3[%c0_20, %c0_21] : memref<6x4xf32, #tpu.memory_space<smem>>
    %54 = vector.extract_strided_slice %17 {offsets = [0, 0], sizes = [4, 32], strides = [1, 1]} : vector<5x32xf32> to vector<4x32xf32>
    %55 = vector.broadcast %53 : f32 to vector<4x32xf32>
    %56 = arith.mulf %55, %54 : vector<4x32xf32>
    %c0_22 = arith.constant 0 : index
    %c1_23 = arith.constant 1 : index
    %57 = memref.load %arg3[%c0_22, %c1_23] : memref<6x4xf32, #tpu.memory_space<smem>>
    %58 = vector.extract_strided_slice %17 {offsets = [1, 0], sizes = [4, 32], strides = [1, 1]} : vector<5x32xf32> to vector<4x32xf32>
    %59 = vector.broadcast %57 : f32 to vector<4x32xf32>
    %60 = arith.mulf %59, %58 : vector<4x32xf32>
    %61 = arith.addf %56, %60 : vector<4x32xf32>
    %c0_24 = arith.constant 0 : index
    %c3_25 = arith.constant 3 : index
    %62 = memref.load %arg3[%c0_24, %c3_25] : memref<6x4xf32, #tpu.memory_space<smem>>
    %63 = vector.broadcast %62 : f32 to vector<4x32xf32>
    %64 = arith.addf %61, %63 : vector<4x32xf32>
    %cst_26 = arith.constant 0.000000e+00 : f32
    %65 = vector.broadcast %cst_26 : f32 to vector<4x32xf32>
    %66 = arith.cmpf ogt, %64, %65 : vector<4x32xf32>
    %cst_27 = arith.constant 0.00999999977 : f32
    %67 = vector.broadcast %cst_27 : f32 to vector<4x32xf32>
    %68 = arith.mulf %67, %64 : vector<4x32xf32>
    %69 = arith.select %66, %64, %68 : vector<4x32xi1>, vector<4x32xf32>
    %c0_28 = arith.constant 0 : index
    %c0_29 = arith.constant 0 : index
    %70 = memref.load %arg3[%c0_28, %c0_29] : memref<6x4xf32, #tpu.memory_space<smem>>
    %71 = vector.extract_strided_slice %18 {offsets = [0, 0], sizes = [4, 32], strides = [1, 1]} : vector<5x32xf32> to vector<4x32xf32>
    %72 = vector.broadcast %70 : f32 to vector<4x32xf32>
    %73 = arith.mulf %72, %71 : vector<4x32xf32>
    %c0_30 = arith.constant 0 : index
    %c1_31 = arith.constant 1 : index
    %74 = memref.load %arg3[%c0_30, %c1_31] : memref<6x4xf32, #tpu.memory_space<smem>>
    %75 = vector.extract_strided_slice %18 {offsets = [1, 0], sizes = [4, 32], strides = [1, 1]} : vector<5x32xf32> to vector<4x32xf32>
    %76 = vector.broadcast %74 : f32 to vector<4x32xf32>
    %77 = arith.mulf %76, %75 : vector<4x32xf32>
    %78 = arith.addf %73, %77 : vector<4x32xf32>
    %c0_32 = arith.constant 0 : index
    %c3_33 = arith.constant 3 : index
    %79 = memref.load %arg3[%c0_32, %c3_33] : memref<6x4xf32, #tpu.memory_space<smem>>
    %80 = vector.broadcast %79 : f32 to vector<4x32xf32>
    %81 = arith.addf %78, %80 : vector<4x32xf32>
    %cst_34 = arith.constant 0.000000e+00 : f32
    %82 = vector.broadcast %cst_34 : f32 to vector<4x32xf32>
    %83 = arith.cmpf ogt, %81, %82 : vector<4x32xf32>
    %cst_35 = arith.constant 0.00999999977 : f32
    %84 = vector.broadcast %cst_35 : f32 to vector<4x32xf32>
    %85 = arith.mulf %84, %81 : vector<4x32xf32>
    %86 = arith.select %83, %81, %85 : vector<4x32xi1>, vector<4x32xf32>
    %c1_36 = arith.constant 1 : index
    %c0_37 = arith.constant 0 : index
    %87 = memref.load %arg3[%c1_36, %c0_37] : memref<6x4xf32, #tpu.memory_space<smem>>
    %88 = vector.extract_strided_slice %35 {offsets = [0, 0], sizes = [3, 32], strides = [1, 1]} : vector<4x32xf32> to vector<3x32xf32>
    %89 = vector.broadcast %87 : f32 to vector<3x32xf32>
    %90 = arith.mulf %89, %88 : vector<3x32xf32>
    %c1_38 = arith.constant 1 : index
    %c1_39 = arith.constant 1 : index
    %91 = memref.load %arg3[%c1_38, %c1_39] : memref<6x4xf32, #tpu.memory_space<smem>>
    %92 = vector.extract_strided_slice %35 {offsets = [1, 0], sizes = [3, 32], strides = [1, 1]} : vector<4x32xf32> to vector<3x32xf32>
    %93 = vector.broadcast %91 : f32 to vector<3x32xf32>
    %94 = arith.mulf %93, %92 : vector<3x32xf32>
    %95 = arith.addf %90, %94 : vector<3x32xf32>
    %c1_40 = arith.constant 1 : index
    %c3_41 = arith.constant 3 : index
    %96 = memref.load %arg3[%c1_40, %c3_41] : memref<6x4xf32, #tpu.memory_space<smem>>
    %97 = vector.broadcast %96 : f32 to vector<3x32xf32>
    %98 = arith.addf %95, %97 : vector<3x32xf32>
    %cst_42 = arith.constant 0.000000e+00 : f32
    %99 = vector.broadcast %cst_42 : f32 to vector<3x32xf32>
    %100 = arith.cmpf ogt, %98, %99 : vector<3x32xf32>
    %cst_43 = arith.constant 0.00999999977 : f32
    %101 = vector.broadcast %cst_43 : f32 to vector<3x32xf32>
    %102 = arith.mulf %101, %98 : vector<3x32xf32>
    %103 = arith.select %100, %98, %102 : vector<3x32xi1>, vector<3x32xf32>
    %c1_44 = arith.constant 1 : index
    %c0_45 = arith.constant 0 : index
    %104 = memref.load %arg3[%c1_44, %c0_45] : memref<6x4xf32, #tpu.memory_space<smem>>
    %105 = vector.extract_strided_slice %52 {offsets = [0, 0], sizes = [3, 32], strides = [1, 1]} : vector<4x32xf32> to vector<3x32xf32>
    %106 = vector.broadcast %104 : f32 to vector<3x32xf32>
    %107 = arith.mulf %106, %105 : vector<3x32xf32>
    %c1_46 = arith.constant 1 : index
    %c1_47 = arith.constant 1 : index
    %108 = memref.load %arg3[%c1_46, %c1_47] : memref<6x4xf32, #tpu.memory_space<smem>>
    %109 = vector.extract_strided_slice %52 {offsets = [1, 0], sizes = [3, 32], strides = [1, 1]} : vector<4x32xf32> to vector<3x32xf32>
    %110 = vector.broadcast %108 : f32 to vector<3x32xf32>
    %111 = arith.mulf %110, %109 : vector<3x32xf32>
    %112 = arith.addf %107, %111 : vector<3x32xf32>
    %c1_48 = arith.constant 1 : index
    %c3_49 = arith.constant 3 : index
    %113 = memref.load %arg3[%c1_48, %c3_49] : memref<6x4xf32, #tpu.memory_space<smem>>
    %114 = vector.broadcast %113 : f32 to vector<3x32xf32>
    %115 = arith.addf %112, %114 : vector<3x32xf32>
    %cst_50 = arith.constant 0.000000e+00 : f32
    %116 = vector.broadcast %cst_50 : f32 to vector<3x32xf32>
    %117 = arith.cmpf ogt, %115, %116 : vector<3x32xf32>
    %cst_51 = arith.constant 0.00999999977 : f32
    %118 = vector.broadcast %cst_51 : f32 to vector<3x32xf32>
    %119 = arith.mulf %118, %115 : vector<3x32xf32>
    %120 = arith.select %117, %115, %119 : vector<3x32xi1>, vector<3x32xf32>
    %c1_52 = arith.constant 1 : index
    %c0_53 = arith.constant 0 : index
    %121 = memref.load %arg3[%c1_52, %c0_53] : memref<6x4xf32, #tpu.memory_space<smem>>
    %122 = vector.extract_strided_slice %69 {offsets = [0, 0], sizes = [3, 32], strides = [1, 1]} : vector<4x32xf32> to vector<3x32xf32>
    %123 = vector.broadcast %121 : f32 to vector<3x32xf32>
    %124 = arith.mulf %123, %122 : vector<3x32xf32>
    %c1_54 = arith.constant 1 : index
    %c1_55 = arith.constant 1 : index
    %125 = memref.load %arg3[%c1_54, %c1_55] : memref<6x4xf32, #tpu.memory_space<smem>>
    %126 = vector.extract_strided_slice %69 {offsets = [1, 0], sizes = [3, 32], strides = [1, 1]} : vector<4x32xf32> to vector<3x32xf32>
    %127 = vector.broadcast %125 : f32 to vector<3x32xf32>
    %128 = arith.mulf %127, %126 : vector<3x32xf32>
    %129 = arith.addf %124, %128 : vector<3x32xf32>
    %c1_56 = arith.constant 1 : index
    %c3_57 = arith.constant 3 : index
    %130 = memref.load %arg3[%c1_56, %c3_57] : memref<6x4xf32, #tpu.memory_space<smem>>
    %131 = vector.broadcast %130 : f32 to vector<3x32xf32>
    %132 = arith.addf %129, %131 : vector<3x32xf32>
    %cst_58 = arith.constant 0.000000e+00 : f32
    %133 = vector.broadcast %cst_58 : f32 to vector<3x32xf32>
    %134 = arith.cmpf ogt, %132, %133 : vector<3x32xf32>
    %cst_59 = arith.constant 0.00999999977 : f32
    %135 = vector.broadcast %cst_59 : f32 to vector<3x32xf32>
    %136 = arith.mulf %135, %132 : vector<3x32xf32>
    %137 = arith.select %134, %132, %136 : vector<3x32xi1>, vector<3x32xf32>
    %c1_60 = arith.constant 1 : index
    %c0_61 = arith.constant 0 : index
    %138 = memref.load %arg3[%c1_60, %c0_61] : memref<6x4xf32, #tpu.memory_space<smem>>
    %139 = vector.extract_strided_slice %86 {offsets = [0, 0], sizes = [3, 32], strides = [1, 1]} : vector<4x32xf32> to vector<3x32xf32>
    %140 = vector.broadcast %138 : f32 to vector<3x32xf32>
    %141 = arith.mulf %140, %139 : vector<3x32xf32>
    %c1_62 = arith.constant 1 : index
    %c1_63 = arith.constant 1 : index
    %142 = memref.load %arg3[%c1_62, %c1_63] : memref<6x4xf32, #tpu.memory_space<smem>>
    %143 = vector.extract_strided_slice %86 {offsets = [1, 0], sizes = [3, 32], strides = [1, 1]} : vector<4x32xf32> to vector<3x32xf32>
    %144 = vector.broadcast %142 : f32 to vector<3x32xf32>
    %145 = arith.mulf %144, %143 : vector<3x32xf32>
    %146 = arith.addf %141, %145 : vector<3x32xf32>
    %c1_64 = arith.constant 1 : index
    %c3_65 = arith.constant 3 : index
    %147 = memref.load %arg3[%c1_64, %c3_65] : memref<6x4xf32, #tpu.memory_space<smem>>
    %148 = vector.broadcast %147 : f32 to vector<3x32xf32>
    %149 = arith.addf %146, %148 : vector<3x32xf32>
    %cst_66 = arith.constant 0.000000e+00 : f32
    %150 = vector.broadcast %cst_66 : f32 to vector<3x32xf32>
    %151 = arith.cmpf ogt, %149, %150 : vector<3x32xf32>
    %cst_67 = arith.constant 0.00999999977 : f32
    %152 = vector.broadcast %cst_67 : f32 to vector<3x32xf32>
    %153 = arith.mulf %152, %149 : vector<3x32xf32>
    %154 = arith.select %151, %149, %153 : vector<3x32xi1>, vector<3x32xf32>
    %c2 = arith.constant 2 : index
    %c0_68 = arith.constant 0 : index
    %155 = memref.load %arg3[%c2, %c0_68] : memref<6x4xf32, #tpu.memory_space<smem>>
    %156 = vector.extract_strided_slice %103 {offsets = [0, 0], sizes = [1, 32], strides = [1, 1]} : vector<3x32xf32> to vector<1x32xf32>
    %157 = vector.broadcast %155 : f32 to vector<1x32xf32>
    %158 = arith.mulf %157, %156 : vector<1x32xf32>
    %c2_69 = arith.constant 2 : index
    %c1_70 = arith.constant 1 : index
    %159 = memref.load %arg3[%c2_69, %c1_70] : memref<6x4xf32, #tpu.memory_space<smem>>
    %160 = vector.extract_strided_slice %103 {offsets = [1, 0], sizes = [1, 32], strides = [1, 1]} : vector<3x32xf32> to vector<1x32xf32>
    %161 = vector.broadcast %159 : f32 to vector<1x32xf32>
    %162 = arith.mulf %161, %160 : vector<1x32xf32>
    %163 = arith.addf %158, %162 : vector<1x32xf32>
    %c2_71 = arith.constant 2 : index
    %c2_72 = arith.constant 2 : index
    %164 = memref.load %arg3[%c2_71, %c2_72] : memref<6x4xf32, #tpu.memory_space<smem>>
    %165 = vector.extract_strided_slice %103 {offsets = [2, 0], sizes = [1, 32], strides = [1, 1]} : vector<3x32xf32> to vector<1x32xf32>
    %166 = vector.broadcast %164 : f32 to vector<1x32xf32>
    %167 = arith.mulf %166, %165 : vector<1x32xf32>
    %168 = arith.addf %163, %167 : vector<1x32xf32>
    %c2_73 = arith.constant 2 : index
    %c3_74 = arith.constant 3 : index
    %169 = memref.load %arg3[%c2_73, %c3_74] : memref<6x4xf32, #tpu.memory_space<smem>>
    %170 = vector.broadcast %169 : f32 to vector<1x32xf32>
    %171 = arith.addf %168, %170 : vector<1x32xf32>
    %cst_75 = arith.constant 0.000000e+00 : f32
    %172 = vector.broadcast %cst_75 : f32 to vector<1x32xf32>
    %173 = arith.cmpf ogt, %171, %172 : vector<1x32xf32>
    %cst_76 = arith.constant 0.00999999977 : f32
    %174 = vector.broadcast %cst_76 : f32 to vector<1x32xf32>
    %175 = arith.mulf %174, %171 : vector<1x32xf32>
    %176 = arith.select %173, %171, %175 : vector<1x32xi1>, vector<1x32xf32>
    %c2_77 = arith.constant 2 : index
    %c0_78 = arith.constant 0 : index
    %177 = memref.load %arg3[%c2_77, %c0_78] : memref<6x4xf32, #tpu.memory_space<smem>>
    %178 = vector.extract_strided_slice %120 {offsets = [0, 0], sizes = [1, 32], strides = [1, 1]} : vector<3x32xf32> to vector<1x32xf32>
    %179 = vector.broadcast %177 : f32 to vector<1x32xf32>
    %180 = arith.mulf %179, %178 : vector<1x32xf32>
    %c2_79 = arith.constant 2 : index
    %c1_80 = arith.constant 1 : index
    %181 = memref.load %arg3[%c2_79, %c1_80] : memref<6x4xf32, #tpu.memory_space<smem>>
    %182 = vector.extract_strided_slice %120 {offsets = [1, 0], sizes = [1, 32], strides = [1, 1]} : vector<3x32xf32> to vector<1x32xf32>
    %183 = vector.broadcast %181 : f32 to vector<1x32xf32>
    %184 = arith.mulf %183, %182 : vector<1x32xf32>
    %185 = arith.addf %180, %184 : vector<1x32xf32>
    %c2_81 = arith.constant 2 : index
    %c2_82 = arith.constant 2 : index
    %186 = memref.load %arg3[%c2_81, %c2_82] : memref<6x4xf32, #tpu.memory_space<smem>>
    %187 = vector.extract_strided_slice %120 {offsets = [2, 0], sizes = [1, 32], strides = [1, 1]} : vector<3x32xf32> to vector<1x32xf32>
    %188 = vector.broadcast %186 : f32 to vector<1x32xf32>
    %189 = arith.mulf %188, %187 : vector<1x32xf32>
    %190 = arith.addf %185, %189 : vector<1x32xf32>
    %c2_83 = arith.constant 2 : index
    %c3_84 = arith.constant 3 : index
    %191 = memref.load %arg3[%c2_83, %c3_84] : memref<6x4xf32, #tpu.memory_space<smem>>
    %192 = vector.broadcast %191 : f32 to vector<1x32xf32>
    %193 = arith.addf %190, %192 : vector<1x32xf32>
    %cst_85 = arith.constant 0.000000e+00 : f32
    %194 = vector.broadcast %cst_85 : f32 to vector<1x32xf32>
    %195 = arith.cmpf ogt, %193, %194 : vector<1x32xf32>
    %cst_86 = arith.constant 0.00999999977 : f32
    %196 = vector.broadcast %cst_86 : f32 to vector<1x32xf32>
    %197 = arith.mulf %196, %193 : vector<1x32xf32>
    %198 = arith.select %195, %193, %197 : vector<1x32xi1>, vector<1x32xf32>
    %c2_87 = arith.constant 2 : index
    %c0_88 = arith.constant 0 : index
    %199 = memref.load %arg3[%c2_87, %c0_88] : memref<6x4xf32, #tpu.memory_space<smem>>
    %200 = vector.extract_strided_slice %137 {offsets = [0, 0], sizes = [1, 32], strides = [1, 1]} : vector<3x32xf32> to vector<1x32xf32>
    %201 = vector.broadcast %199 : f32 to vector<1x32xf32>
    %202 = arith.mulf %201, %200 : vector<1x32xf32>
    %c2_89 = arith.constant 2 : index
    %c1_90 = arith.constant 1 : index
    %203 = memref.load %arg3[%c2_89, %c1_90] : memref<6x4xf32, #tpu.memory_space<smem>>
    %204 = vector.extract_strided_slice %137 {offsets = [1, 0], sizes = [1, 32], strides = [1, 1]} : vector<3x32xf32> to vector<1x32xf32>
    %205 = vector.broadcast %203 : f32 to vector<1x32xf32>
    %206 = arith.mulf %205, %204 : vector<1x32xf32>
    %207 = arith.addf %202, %206 : vector<1x32xf32>
    %c2_91 = arith.constant 2 : index
    %c2_92 = arith.constant 2 : index
    %208 = memref.load %arg3[%c2_91, %c2_92] : memref<6x4xf32, #tpu.memory_space<smem>>
    %209 = vector.extract_strided_slice %137 {offsets = [2, 0], sizes = [1, 32], strides = [1, 1]} : vector<3x32xf32> to vector<1x32xf32>
    %210 = vector.broadcast %208 : f32 to vector<1x32xf32>
    %211 = arith.mulf %210, %209 : vector<1x32xf32>
    %212 = arith.addf %207, %211 : vector<1x32xf32>
    %c2_93 = arith.constant 2 : index
    %c3_94 = arith.constant 3 : index
    %213 = memref.load %arg3[%c2_93, %c3_94] : memref<6x4xf32, #tpu.memory_space<smem>>
    %214 = vector.broadcast %213 : f32 to vector<1x32xf32>
    %215 = arith.addf %212, %214 : vector<1x32xf32>
    %cst_95 = arith.constant 0.000000e+00 : f32
    %216 = vector.broadcast %cst_95 : f32 to vector<1x32xf32>
    %217 = arith.cmpf ogt, %215, %216 : vector<1x32xf32>
    %cst_96 = arith.constant 0.00999999977 : f32
    %218 = vector.broadcast %cst_96 : f32 to vector<1x32xf32>
    %219 = arith.mulf %218, %215 : vector<1x32xf32>
    %220 = arith.select %217, %215, %219 : vector<1x32xi1>, vector<1x32xf32>
    %c2_97 = arith.constant 2 : index
    %c0_98 = arith.constant 0 : index
    %221 = memref.load %arg3[%c2_97, %c0_98] : memref<6x4xf32, #tpu.memory_space<smem>>
    %222 = vector.extract_strided_slice %154 {offsets = [0, 0], sizes = [1, 32], strides = [1, 1]} : vector<3x32xf32> to vector<1x32xf32>
    %223 = vector.broadcast %221 : f32 to vector<1x32xf32>
    %224 = arith.mulf %223, %222 : vector<1x32xf32>
    %c2_99 = arith.constant 2 : index
    %c1_100 = arith.constant 1 : index
    %225 = memref.load %arg3[%c2_99, %c1_100] : memref<6x4xf32, #tpu.memory_space<smem>>
    %226 = vector.extract_strided_slice %154 {offsets = [1, 0], sizes = [1, 32], strides = [1, 1]} : vector<3x32xf32> to vector<1x32xf32>
    %227 = vector.broadcast %225 : f32 to vector<1x32xf32>
    %228 = arith.mulf %227, %226 : vector<1x32xf32>
    %229 = arith.addf %224, %228 : vector<1x32xf32>
    %c2_101 = arith.constant 2 : index
    %c2_102 = arith.constant 2 : index
    %230 = memref.load %arg3[%c2_101, %c2_102] : memref<6x4xf32, #tpu.memory_space<smem>>
    %231 = vector.extract_strided_slice %154 {offsets = [2, 0], sizes = [1, 32], strides = [1, 1]} : vector<3x32xf32> to vector<1x32xf32>
    %232 = vector.broadcast %230 : f32 to vector<1x32xf32>
    %233 = arith.mulf %232, %231 : vector<1x32xf32>
    %234 = arith.addf %229, %233 : vector<1x32xf32>
    %c2_103 = arith.constant 2 : index
    %c3_104 = arith.constant 3 : index
    %235 = memref.load %arg3[%c2_103, %c3_104] : memref<6x4xf32, #tpu.memory_space<smem>>
    %236 = vector.broadcast %235 : f32 to vector<1x32xf32>
    %237 = arith.addf %234, %236 : vector<1x32xf32>
    %cst_105 = arith.constant 0.000000e+00 : f32
    %238 = vector.broadcast %cst_105 : f32 to vector<1x32xf32>
    %239 = arith.cmpf ogt, %237, %238 : vector<1x32xf32>
    %cst_106 = arith.constant 0.00999999977 : f32
    %240 = vector.broadcast %cst_106 : f32 to vector<1x32xf32>
    %241 = arith.mulf %240, %237 : vector<1x32xf32>
    %242 = arith.select %239, %237, %241 : vector<1x32xi1>, vector<1x32xf32>
    %c4 = arith.constant 4 : index
    %c0_107 = arith.constant 0 : index
    %243 = memref.load %arg3[%c4, %c0_107] : memref<6x4xf32, #tpu.memory_space<smem>>
    %244 = vector.broadcast %243 : f32 to vector<1x32xf32>
    %245 = arith.mulf %244, %176 : vector<1x32xf32>
    %c4_108 = arith.constant 4 : index
    %c1_109 = arith.constant 1 : index
    %246 = memref.load %arg3[%c4_108, %c1_109] : memref<6x4xf32, #tpu.memory_space<smem>>
    %247 = vector.broadcast %246 : f32 to vector<1x32xf32>
    %248 = arith.mulf %247, %198 : vector<1x32xf32>
    %249 = arith.addf %245, %248 : vector<1x32xf32>
    %c4_110 = arith.constant 4 : index
    %c3_111 = arith.constant 3 : index
    %250 = memref.load %arg3[%c4_110, %c3_111] : memref<6x4xf32, #tpu.memory_space<smem>>
    %251 = vector.broadcast %250 : f32 to vector<1x32xf32>
    %252 = arith.addf %249, %251 : vector<1x32xf32>
    %cst_112 = arith.constant 0.000000e+00 : f32
    %253 = vector.broadcast %cst_112 : f32 to vector<1x32xf32>
    %254 = arith.cmpf ogt, %252, %253 : vector<1x32xf32>
    %cst_113 = arith.constant 0.00999999977 : f32
    %255 = vector.broadcast %cst_113 : f32 to vector<1x32xf32>
    %256 = arith.mulf %255, %252 : vector<1x32xf32>
    %257 = arith.select %254, %252, %256 : vector<1x32xi1>, vector<1x32xf32>
    %c4_114 = arith.constant 4 : index
    %c0_115 = arith.constant 0 : index
    %258 = memref.load %arg3[%c4_114, %c0_115] : memref<6x4xf32, #tpu.memory_space<smem>>
    %259 = vector.broadcast %258 : f32 to vector<1x32xf32>
    %260 = arith.mulf %259, %220 : vector<1x32xf32>
    %c4_116 = arith.constant 4 : index
    %c1_117 = arith.constant 1 : index
    %261 = memref.load %arg3[%c4_116, %c1_117] : memref<6x4xf32, #tpu.memory_space<smem>>
    %262 = vector.broadcast %261 : f32 to vector<1x32xf32>
    %263 = arith.mulf %262, %242 : vector<1x32xf32>
    %264 = arith.addf %260, %263 : vector<1x32xf32>
    %c4_118 = arith.constant 4 : index
    %c3_119 = arith.constant 3 : index
    %265 = memref.load %arg3[%c4_118, %c3_119] : memref<6x4xf32, #tpu.memory_space<smem>>
    %266 = vector.broadcast %265 : f32 to vector<1x32xf32>
    %267 = arith.addf %264, %266 : vector<1x32xf32>
    %cst_120 = arith.constant 0.000000e+00 : f32
    %268 = vector.broadcast %cst_120 : f32 to vector<1x32xf32>
    %269 = arith.cmpf ogt, %267, %268 : vector<1x32xf32>
    %cst_121 = arith.constant 0.00999999977 : f32
    %270 = vector.broadcast %cst_121 : f32 to vector<1x32xf32>
    %271 = arith.mulf %270, %267 : vector<1x32xf32>
    %272 = arith.select %269, %267, %271 : vector<1x32xi1>, vector<1x32xf32>
    %273 = tpu.concatenate %257, %272 in 0 : vector<1x32xf32>, vector<1x32xf32> -> vector<2x32xf32>
    %c0_122 = arith.constant 0 : index
    %c0_123 = arith.constant 0 : index
    %274 = vector.load %arg4[%c0_122, %c0_123] : memref<32x128xf32, #tpu.memory_space<vmem>>, vector<32x128xf32>
    %cst_124 = arith.constant dense<0.000000e+00> : vector<16x128xf32>
    %275 = tpu.matmul %7, %274, %cst_124 {dimension_numbers = #tpu.dot_dimension_numbers<[1], [0], [0], [1], [0, 0, 1, 1], [], []>} : vector<16x32xf32>, vector<32x128xf32>, vector<16x128xf32> -> vector<16x128xf32>
    %c0_125 = arith.constant 0 : index
    %c0_126 = arith.constant 0 : index
    %276 = vector.load %arg5[%c0_125, %c0_126] : memref<32x128xf32, #tpu.memory_space<vmem>>, vector<32x128xf32>
    %cst_127 = arith.constant dense<0.000000e+00> : vector<2x128xf32>
    %277 = tpu.matmul %273, %276, %cst_127 {dimension_numbers = #tpu.dot_dimension_numbers<[1], [0], [0], [1], [0, 0, 1, 1], [], []>} : vector<2x32xf32>, vector<32x128xf32>, vector<2x128xf32> -> vector<2x128xf32>
    %c0_128 = arith.constant 0 : index
    %c0_129 = arith.constant 0 : index
    %278 = vector.load %arg7[%c0_128, %c0_129] : memref<1x128xf32, #tpu.memory_space<vmem>>, vector<1x128xf32>
    %279 = vector.broadcast %278 : vector<1x128xf32> to vector<2x128xf32>
    %280 = arith.addf %277, %279 : vector<2x128xf32>
    %281 = vector.extract_strided_slice %275 {offsets = [0, 0], sizes = [2, 128], strides = [1, 1]} : vector<16x128xf32> to vector<2x128xf32>
    %282 = arith.addf %281, %280 : vector<2x128xf32>
    %283 = vector.extract_strided_slice %275 {offsets = [2, 0], sizes = [2, 128], strides = [1, 1]} : vector<16x128xf32> to vector<2x128xf32>
    %284 = arith.addf %283, %280 : vector<2x128xf32>
    %285 = vector.extract_strided_slice %275 {offsets = [4, 0], sizes = [2, 128], strides = [1, 1]} : vector<16x128xf32> to vector<2x128xf32>
    %286 = arith.addf %285, %280 : vector<2x128xf32>
    %287 = vector.extract_strided_slice %275 {offsets = [6, 0], sizes = [2, 128], strides = [1, 1]} : vector<16x128xf32> to vector<2x128xf32>
    %288 = arith.addf %287, %280 : vector<2x128xf32>
    %289 = vector.extract_strided_slice %275 {offsets = [8, 0], sizes = [2, 128], strides = [1, 1]} : vector<16x128xf32> to vector<2x128xf32>
    %290 = arith.addf %289, %280 : vector<2x128xf32>
    %291 = vector.extract_strided_slice %275 {offsets = [10, 0], sizes = [2, 128], strides = [1, 1]} : vector<16x128xf32> to vector<2x128xf32>
    %292 = arith.addf %291, %280 : vector<2x128xf32>
    %293 = vector.extract_strided_slice %275 {offsets = [12, 0], sizes = [2, 128], strides = [1, 1]} : vector<16x128xf32> to vector<2x128xf32>
    %294 = arith.addf %293, %280 : vector<2x128xf32>
    %295 = vector.extract_strided_slice %275 {offsets = [14, 0], sizes = [2, 128], strides = [1, 1]} : vector<16x128xf32> to vector<2x128xf32>
    %296 = arith.addf %295, %280 : vector<2x128xf32>
    %c0_130 = arith.constant 0 : index
    %c0_131 = arith.constant 0 : index
    %297 = vector.load %arg6[%c0_130, %c0_131] : memref<32x128xf32, #tpu.memory_space<vmem>>, vector<32x128xf32>
    %c0_132 = arith.constant 0 : index
    %c0_133 = arith.constant 0 : index
    %298 = vector.load %arg10[%c0_132, %c0_133] : memref<2x32xf32, #tpu.memory_space<vmem>>, vector<2x32xf32>
    %c0_134 = arith.constant 0 : index
    %c0_135 = arith.constant 0 : index
    %299 = vector.load %arg11[%c0_134, %c0_135] : memref<2x32xf32, #tpu.memory_space<vmem>>, vector<2x32xf32>
    %cst_136 = arith.constant dense<0.000000e+00> : vector<2x128xf32>
    %300 = tpu.matmul %298, %297, %cst_136 {dimension_numbers = #tpu.dot_dimension_numbers<[1], [0], [0], [1], [0, 0, 1, 1], [], []>} : vector<2x32xf32>, vector<32x128xf32>, vector<2x128xf32> -> vector<2x128xf32>
    %301 = arith.addf %282, %300 : vector<2x128xf32>
    %302 = vector.extract_strided_slice %301 {offsets = [0, 0], sizes = [2, 96], strides = [1, 1]} : vector<2x128xf32> to vector<2x96xf32>
    %303 = arith.negf %302 : vector<2x96xf32>
    %304 = math.exp %303 : vector<2x96xf32>
    %cst_137 = arith.constant 1.000000e+00 : f32
    %305 = vector.broadcast %cst_137 : f32 to vector<2x96xf32>
    %306 = arith.addf %305, %304 : vector<2x96xf32>
    %307 = arith.divf %305, %306 : vector<2x96xf32>
    %308 = vector.extract_strided_slice %301 {offsets = [0, 96], sizes = [2, 32], strides = [1, 1]} : vector<2x128xf32> to vector<2x32xf32>
    %309 = math.tanh %308 : vector<2x32xf32>
    %310 = vector.extract_strided_slice %307 {offsets = [0, 32], sizes = [2, 32], strides = [1, 1]} : vector<2x96xf32> to vector<2x32xf32>
    %311 = arith.mulf %310, %299 : vector<2x32xf32>
    %312 = vector.extract_strided_slice %307 {offsets = [0, 0], sizes = [2, 32], strides = [1, 1]} : vector<2x96xf32> to vector<2x32xf32>
    %313 = arith.mulf %312, %309 : vector<2x32xf32>
    %314 = arith.addf %311, %313 : vector<2x32xf32>
    %315 = vector.extract_strided_slice %307 {offsets = [0, 64], sizes = [2, 32], strides = [1, 1]} : vector<2x96xf32> to vector<2x32xf32>
    %316 = math.tanh %314 : vector<2x32xf32>
    %317 = arith.mulf %315, %316 : vector<2x32xf32>
    %cst_138 = arith.constant dense<0.000000e+00> : vector<2x128xf32>
    %318 = tpu.matmul %317, %297, %cst_138 {dimension_numbers = #tpu.dot_dimension_numbers<[1], [0], [0], [1], [0, 0, 1, 1], [], []>} : vector<2x32xf32>, vector<32x128xf32>, vector<2x128xf32> -> vector<2x128xf32>
    %319 = arith.addf %284, %318 : vector<2x128xf32>
    %320 = vector.extract_strided_slice %319 {offsets = [0, 0], sizes = [2, 96], strides = [1, 1]} : vector<2x128xf32> to vector<2x96xf32>
    %321 = arith.negf %320 : vector<2x96xf32>
    %322 = math.exp %321 : vector<2x96xf32>
    %cst_139 = arith.constant 1.000000e+00 : f32
    %323 = vector.broadcast %cst_139 : f32 to vector<2x96xf32>
    %324 = arith.addf %323, %322 : vector<2x96xf32>
    %325 = arith.divf %323, %324 : vector<2x96xf32>
    %326 = vector.extract_strided_slice %319 {offsets = [0, 96], sizes = [2, 32], strides = [1, 1]} : vector<2x128xf32> to vector<2x32xf32>
    %327 = math.tanh %326 : vector<2x32xf32>
    %328 = vector.extract_strided_slice %325 {offsets = [0, 32], sizes = [2, 32], strides = [1, 1]} : vector<2x96xf32> to vector<2x32xf32>
    %329 = arith.mulf %328, %314 : vector<2x32xf32>
    %330 = vector.extract_strided_slice %325 {offsets = [0, 0], sizes = [2, 32], strides = [1, 1]} : vector<2x96xf32> to vector<2x32xf32>
    %331 = arith.mulf %330, %327 : vector<2x32xf32>
    %332 = arith.addf %329, %331 : vector<2x32xf32>
    %333 = vector.extract_strided_slice %325 {offsets = [0, 64], sizes = [2, 32], strides = [1, 1]} : vector<2x96xf32> to vector<2x32xf32>
    %334 = math.tanh %332 : vector<2x32xf32>
    %335 = arith.mulf %333, %334 : vector<2x32xf32>
    %cst_140 = arith.constant dense<0.000000e+00> : vector<2x128xf32>
    %336 = tpu.matmul %335, %297, %cst_140 {dimension_numbers = #tpu.dot_dimension_numbers<[1], [0], [0], [1], [0, 0, 1, 1], [], []>} : vector<2x32xf32>, vector<32x128xf32>, vector<2x128xf32> -> vector<2x128xf32>
    %337 = arith.addf %286, %336 : vector<2x128xf32>
    %338 = vector.extract_strided_slice %337 {offsets = [0, 0], sizes = [2, 96], strides = [1, 1]} : vector<2x128xf32> to vector<2x96xf32>
    %339 = arith.negf %338 : vector<2x96xf32>
    %340 = math.exp %339 : vector<2x96xf32>
    %cst_141 = arith.constant 1.000000e+00 : f32
    %341 = vector.broadcast %cst_141 : f32 to vector<2x96xf32>
    %342 = arith.addf %341, %340 : vector<2x96xf32>
    %343 = arith.divf %341, %342 : vector<2x96xf32>
    %344 = vector.extract_strided_slice %337 {offsets = [0, 96], sizes = [2, 32], strides = [1, 1]} : vector<2x128xf32> to vector<2x32xf32>
    %345 = math.tanh %344 : vector<2x32xf32>
    %346 = vector.extract_strided_slice %343 {offsets = [0, 32], sizes = [2, 32], strides = [1, 1]} : vector<2x96xf32> to vector<2x32xf32>
    %347 = arith.mulf %346, %332 : vector<2x32xf32>
    %348 = vector.extract_strided_slice %343 {offsets = [0, 0], sizes = [2, 32], strides = [1, 1]} : vector<2x96xf32> to vector<2x32xf32>
    %349 = arith.mulf %348, %345 : vector<2x32xf32>
    %350 = arith.addf %347, %349 : vector<2x32xf32>
    %351 = vector.extract_strided_slice %343 {offsets = [0, 64], sizes = [2, 32], strides = [1, 1]} : vector<2x96xf32> to vector<2x32xf32>
    %352 = math.tanh %350 : vector<2x32xf32>
    %353 = arith.mulf %351, %352 : vector<2x32xf32>
    %cst_142 = arith.constant dense<0.000000e+00> : vector<2x128xf32>
    %354 = tpu.matmul %353, %297, %cst_142 {dimension_numbers = #tpu.dot_dimension_numbers<[1], [0], [0], [1], [0, 0, 1, 1], [], []>} : vector<2x32xf32>, vector<32x128xf32>, vector<2x128xf32> -> vector<2x128xf32>
    %355 = arith.addf %288, %354 : vector<2x128xf32>
    %356 = vector.extract_strided_slice %355 {offsets = [0, 0], sizes = [2, 96], strides = [1, 1]} : vector<2x128xf32> to vector<2x96xf32>
    %357 = arith.negf %356 : vector<2x96xf32>
    %358 = math.exp %357 : vector<2x96xf32>
    %cst_143 = arith.constant 1.000000e+00 : f32
    %359 = vector.broadcast %cst_143 : f32 to vector<2x96xf32>
    %360 = arith.addf %359, %358 : vector<2x96xf32>
    %361 = arith.divf %359, %360 : vector<2x96xf32>
    %362 = vector.extract_strided_slice %355 {offsets = [0, 96], sizes = [2, 32], strides = [1, 1]} : vector<2x128xf32> to vector<2x32xf32>
    %363 = math.tanh %362 : vector<2x32xf32>
    %364 = vector.extract_strided_slice %361 {offsets = [0, 32], sizes = [2, 32], strides = [1, 1]} : vector<2x96xf32> to vector<2x32xf32>
    %365 = arith.mulf %364, %350 : vector<2x32xf32>
    %366 = vector.extract_strided_slice %361 {offsets = [0, 0], sizes = [2, 32], strides = [1, 1]} : vector<2x96xf32> to vector<2x32xf32>
    %367 = arith.mulf %366, %363 : vector<2x32xf32>
    %368 = arith.addf %365, %367 : vector<2x32xf32>
    %369 = vector.extract_strided_slice %361 {offsets = [0, 64], sizes = [2, 32], strides = [1, 1]} : vector<2x96xf32> to vector<2x32xf32>
    %370 = math.tanh %368 : vector<2x32xf32>
    %371 = arith.mulf %369, %370 : vector<2x32xf32>
    %cst_144 = arith.constant dense<0.000000e+00> : vector<2x128xf32>
    %372 = tpu.matmul %371, %297, %cst_144 {dimension_numbers = #tpu.dot_dimension_numbers<[1], [0], [0], [1], [0, 0, 1, 1], [], []>} : vector<2x32xf32>, vector<32x128xf32>, vector<2x128xf32> -> vector<2x128xf32>
    %373 = arith.addf %290, %372 : vector<2x128xf32>
    %374 = vector.extract_strided_slice %373 {offsets = [0, 0], sizes = [2, 96], strides = [1, 1]} : vector<2x128xf32> to vector<2x96xf32>
    %375 = arith.negf %374 : vector<2x96xf32>
    %376 = math.exp %375 : vector<2x96xf32>
    %cst_145 = arith.constant 1.000000e+00 : f32
    %377 = vector.broadcast %cst_145 : f32 to vector<2x96xf32>
    %378 = arith.addf %377, %376 : vector<2x96xf32>
    %379 = arith.divf %377, %378 : vector<2x96xf32>
    %380 = vector.extract_strided_slice %373 {offsets = [0, 96], sizes = [2, 32], strides = [1, 1]} : vector<2x128xf32> to vector<2x32xf32>
    %381 = math.tanh %380 : vector<2x32xf32>
    %382 = vector.extract_strided_slice %379 {offsets = [0, 32], sizes = [2, 32], strides = [1, 1]} : vector<2x96xf32> to vector<2x32xf32>
    %383 = arith.mulf %382, %368 : vector<2x32xf32>
    %384 = vector.extract_strided_slice %379 {offsets = [0, 0], sizes = [2, 32], strides = [1, 1]} : vector<2x96xf32> to vector<2x32xf32>
    %385 = arith.mulf %384, %381 : vector<2x32xf32>
    %386 = arith.addf %383, %385 : vector<2x32xf32>
    %387 = vector.extract_strided_slice %379 {offsets = [0, 64], sizes = [2, 32], strides = [1, 1]} : vector<2x96xf32> to vector<2x32xf32>
    %388 = math.tanh %386 : vector<2x32xf32>
    %389 = arith.mulf %387, %388 : vector<2x32xf32>
    %cst_146 = arith.constant dense<0.000000e+00> : vector<2x128xf32>
    %390 = tpu.matmul %389, %297, %cst_146 {dimension_numbers = #tpu.dot_dimension_numbers<[1], [0], [0], [1], [0, 0, 1, 1], [], []>} : vector<2x32xf32>, vector<32x128xf32>, vector<2x128xf32> -> vector<2x128xf32>
    %391 = arith.addf %292, %390 : vector<2x128xf32>
    %392 = vector.extract_strided_slice %391 {offsets = [0, 0], sizes = [2, 96], strides = [1, 1]} : vector<2x128xf32> to vector<2x96xf32>
    %393 = arith.negf %392 : vector<2x96xf32>
    %394 = math.exp %393 : vector<2x96xf32>
    %cst_147 = arith.constant 1.000000e+00 : f32
    %395 = vector.broadcast %cst_147 : f32 to vector<2x96xf32>
    %396 = arith.addf %395, %394 : vector<2x96xf32>
    %397 = arith.divf %395, %396 : vector<2x96xf32>
    %398 = vector.extract_strided_slice %391 {offsets = [0, 96], sizes = [2, 32], strides = [1, 1]} : vector<2x128xf32> to vector<2x32xf32>
    %399 = math.tanh %398 : vector<2x32xf32>
    %400 = vector.extract_strided_slice %397 {offsets = [0, 32], sizes = [2, 32], strides = [1, 1]} : vector<2x96xf32> to vector<2x32xf32>
    %401 = arith.mulf %400, %386 : vector<2x32xf32>
    %402 = vector.extract_strided_slice %397 {offsets = [0, 0], sizes = [2, 32], strides = [1, 1]} : vector<2x96xf32> to vector<2x32xf32>
    %403 = arith.mulf %402, %399 : vector<2x32xf32>
    %404 = arith.addf %401, %403 : vector<2x32xf32>
    %405 = vector.extract_strided_slice %397 {offsets = [0, 64], sizes = [2, 32], strides = [1, 1]} : vector<2x96xf32> to vector<2x32xf32>
    %406 = math.tanh %404 : vector<2x32xf32>
    %407 = arith.mulf %405, %406 : vector<2x32xf32>
    %cst_148 = arith.constant dense<0.000000e+00> : vector<2x128xf32>
    %408 = tpu.matmul %407, %297, %cst_148 {dimension_numbers = #tpu.dot_dimension_numbers<[1], [0], [0], [1], [0, 0, 1, 1], [], []>} : vector<2x32xf32>, vector<32x128xf32>, vector<2x128xf32> -> vector<2x128xf32>
    %409 = arith.addf %294, %408 : vector<2x128xf32>
    %410 = vector.extract_strided_slice %409 {offsets = [0, 0], sizes = [2, 96], strides = [1, 1]} : vector<2x128xf32> to vector<2x96xf32>
    %411 = arith.negf %410 : vector<2x96xf32>
    %412 = math.exp %411 : vector<2x96xf32>
    %cst_149 = arith.constant 1.000000e+00 : f32
    %413 = vector.broadcast %cst_149 : f32 to vector<2x96xf32>
    %414 = arith.addf %413, %412 : vector<2x96xf32>
    %415 = arith.divf %413, %414 : vector<2x96xf32>
    %416 = vector.extract_strided_slice %409 {offsets = [0, 96], sizes = [2, 32], strides = [1, 1]} : vector<2x128xf32> to vector<2x32xf32>
    %417 = math.tanh %416 : vector<2x32xf32>
    %418 = vector.extract_strided_slice %415 {offsets = [0, 32], sizes = [2, 32], strides = [1, 1]} : vector<2x96xf32> to vector<2x32xf32>
    %419 = arith.mulf %418, %404 : vector<2x32xf32>
    %420 = vector.extract_strided_slice %415 {offsets = [0, 0], sizes = [2, 32], strides = [1, 1]} : vector<2x96xf32> to vector<2x32xf32>
    %421 = arith.mulf %420, %417 : vector<2x32xf32>
    %422 = arith.addf %419, %421 : vector<2x32xf32>
    %423 = vector.extract_strided_slice %415 {offsets = [0, 64], sizes = [2, 32], strides = [1, 1]} : vector<2x96xf32> to vector<2x32xf32>
    %424 = math.tanh %422 : vector<2x32xf32>
    %425 = arith.mulf %423, %424 : vector<2x32xf32>
    %cst_150 = arith.constant dense<0.000000e+00> : vector<2x128xf32>
    %426 = tpu.matmul %425, %297, %cst_150 {dimension_numbers = #tpu.dot_dimension_numbers<[1], [0], [0], [1], [0, 0, 1, 1], [], []>} : vector<2x32xf32>, vector<32x128xf32>, vector<2x128xf32> -> vector<2x128xf32>
    %427 = arith.addf %296, %426 : vector<2x128xf32>
    %428 = vector.extract_strided_slice %427 {offsets = [0, 0], sizes = [2, 96], strides = [1, 1]} : vector<2x128xf32> to vector<2x96xf32>
    %429 = arith.negf %428 : vector<2x96xf32>
    %430 = math.exp %429 : vector<2x96xf32>
    %cst_151 = arith.constant 1.000000e+00 : f32
    %431 = vector.broadcast %cst_151 : f32 to vector<2x96xf32>
    %432 = arith.addf %431, %430 : vector<2x96xf32>
    %433 = arith.divf %431, %432 : vector<2x96xf32>
    %434 = vector.extract_strided_slice %427 {offsets = [0, 96], sizes = [2, 32], strides = [1, 1]} : vector<2x128xf32> to vector<2x32xf32>
    %435 = math.tanh %434 : vector<2x32xf32>
    %436 = vector.extract_strided_slice %433 {offsets = [0, 32], sizes = [2, 32], strides = [1, 1]} : vector<2x96xf32> to vector<2x32xf32>
    %437 = arith.mulf %436, %422 : vector<2x32xf32>
    %438 = vector.extract_strided_slice %433 {offsets = [0, 0], sizes = [2, 32], strides = [1, 1]} : vector<2x96xf32> to vector<2x32xf32>
    %439 = arith.mulf %438, %435 : vector<2x32xf32>
    %440 = arith.addf %437, %439 : vector<2x32xf32>
    %441 = vector.extract_strided_slice %433 {offsets = [0, 64], sizes = [2, 32], strides = [1, 1]} : vector<2x96xf32> to vector<2x32xf32>
    %442 = math.tanh %440 : vector<2x32xf32>
    %443 = arith.mulf %441, %442 : vector<2x32xf32>
    %c0_152 = arith.constant 0 : index
    %c0_153 = arith.constant 0 : index
    %444 = vector.load %arg13[%c0_152, %c0_153] : memref<2x32xf32, #tpu.memory_space<vmem>>, vector<2x32xf32>
    tpu.vector_store %arg13[%c0_152, %c0_153], %443 {strides = array<i32>} : memref<2x32xf32, #tpu.memory_space<vmem>>, vector<2x32xf32>,
    %c0_154 = arith.constant 0 : index
    %c0_155 = arith.constant 0 : index
    %445 = vector.load %arg14[%c0_154, %c0_155] : memref<2x32xf32, #tpu.memory_space<vmem>>, vector<2x32xf32>
    tpu.vector_store %arg14[%c0_154, %c0_155], %440 {strides = array<i32>} : memref<2x32xf32, #tpu.memory_space<vmem>>, vector<2x32xf32>,
    %446 = vector.extract_strided_slice %317 {offsets = [0, 0], sizes = [1, 32], strides = [1, 1]} : vector<2x32xf32> to vector<1x32xf32>
    %447 = vector.extract_strided_slice %335 {offsets = [0, 0], sizes = [1, 32], strides = [1, 1]} : vector<2x32xf32> to vector<1x32xf32>
    %448 = vector.extract_strided_slice %353 {offsets = [0, 0], sizes = [1, 32], strides = [1, 1]} : vector<2x32xf32> to vector<1x32xf32>
    %449 = vector.extract_strided_slice %371 {offsets = [0, 0], sizes = [1, 32], strides = [1, 1]} : vector<2x32xf32> to vector<1x32xf32>
    %450 = vector.extract_strided_slice %389 {offsets = [0, 0], sizes = [1, 32], strides = [1, 1]} : vector<2x32xf32> to vector<1x32xf32>
    %451 = vector.extract_strided_slice %407 {offsets = [0, 0], sizes = [1, 32], strides = [1, 1]} : vector<2x32xf32> to vector<1x32xf32>
    %452 = vector.extract_strided_slice %425 {offsets = [0, 0], sizes = [1, 32], strides = [1, 1]} : vector<2x32xf32> to vector<1x32xf32>
    %453 = vector.extract_strided_slice %443 {offsets = [0, 0], sizes = [1, 32], strides = [1, 1]} : vector<2x32xf32> to vector<1x32xf32>
    %454 = vector.extract_strided_slice %317 {offsets = [1, 0], sizes = [1, 32], strides = [1, 1]} : vector<2x32xf32> to vector<1x32xf32>
    %455 = vector.extract_strided_slice %335 {offsets = [1, 0], sizes = [1, 32], strides = [1, 1]} : vector<2x32xf32> to vector<1x32xf32>
    %456 = vector.extract_strided_slice %353 {offsets = [1, 0], sizes = [1, 32], strides = [1, 1]} : vector<2x32xf32> to vector<1x32xf32>
    %457 = vector.extract_strided_slice %371 {offsets = [1, 0], sizes = [1, 32], strides = [1, 1]} : vector<2x32xf32> to vector<1x32xf32>
    %458 = vector.extract_strided_slice %389 {offsets = [1, 0], sizes = [1, 32], strides = [1, 1]} : vector<2x32xf32> to vector<1x32xf32>
    %459 = vector.extract_strided_slice %407 {offsets = [1, 0], sizes = [1, 32], strides = [1, 1]} : vector<2x32xf32> to vector<1x32xf32>
    %460 = vector.extract_strided_slice %425 {offsets = [1, 0], sizes = [1, 32], strides = [1, 1]} : vector<2x32xf32> to vector<1x32xf32>
    %461 = vector.extract_strided_slice %443 {offsets = [1, 0], sizes = [1, 32], strides = [1, 1]} : vector<2x32xf32> to vector<1x32xf32>
    %462 = tpu.concatenate %446, %447, %448, %449, %450, %451, %452, %453, %454, %455, %456, %457, %458, %459, %460, %461 in 0 : vector<1x32xf32>, vector<1x32xf32>, vector<1x32xf32>, vector<1x32xf32>, vector<1x32xf32>, vector<1x32xf32>, vector<1x32xf32>, vector<1x32xf32>, vector<1x32xf32>, vector<1x32xf32>, vector<1x32xf32>, vector<1x32xf32>, vector<1x32xf32>, vector<1x32xf32>, vector<1x32xf32>, vector<1x32xf32> -> vector<16x32xf32>
    %c0_156 = arith.constant 0 : index
    %c0_157 = arith.constant 0 : index
    %463 = vector.load %arg8[%c0_156, %c0_157] : memref<32x128xf32, #tpu.memory_space<vmem>>, vector<32x128xf32>
    %cst_158 = arith.constant dense<0.000000e+00> : vector<16x128xf32>
    %464 = tpu.matmul %462, %463, %cst_158 {dimension_numbers = #tpu.dot_dimension_numbers<[1], [0], [0], [1], [0, 0, 1, 1], [], []>} : vector<16x32xf32>, vector<32x128xf32>, vector<16x128xf32> -> vector<16x128xf32>
    %c0_159 = arith.constant 0 : index
    %c0_160 = arith.constant 0 : index
    %465 = vector.load %arg9[%c0_159, %c0_160] : memref<1x128xf32, #tpu.memory_space<vmem>>, vector<1x128xf32>
    %466 = vector.broadcast %465 : vector<1x128xf32> to vector<16x128xf32>
    %467 = arith.addf %464, %466 : vector<16x128xf32>
    %c0_161 = arith.constant 0 : index
    %c0_162 = arith.constant 0 : index
    %468 = vector.load %arg12[%c0_161, %c0_162] : memref<16x128xf32, #tpu.memory_space<vmem>>, vector<16x128xf32>
    tpu.vector_store %arg12[%c0_161, %c0_162], %467 {strides = array<i32>} : memref<16x128xf32, #tpu.memory_space<vmem>>, vector<16x128xf32>,
    return
  }
}

</mosaic_0001>

<bundles_post_ra>
// kernel: poetry_generator_forward.1
= control target key start
LH: loop header
LB: loop body
LE: loop exit
PB: predicated region body
PF: predicated region fallthrough
CT: control target
= control target key end

     0   :  { %20 = vsyncpa [#allocation5], 0  ;;  %s1845_s0 = inlined_call_operand.vmem [shape: s32[16,1], index: 0, kind: input, shape index: {}]   ;;  %s1846_s1 = inlined_call_operand.vmem [shape: s32[20,1], index: 1, kind: input, shape index: {}]   ;;  %s1847_s2 = inlined_call_operand.vmem [shape: f32[64,32], index: 2, kind: input, shape index: {}]   ;;  %s1848_s3 = inlined_call_operand.vmem [shape: f32[6,4], index: 3, kind: input, shape index: {}]   ;;  %s1849_s4 = inlined_call_operand.vmem [shape: f32[32,128], index: 4, kind: input, shape index: {}]   ;;  %s1850_s5 = inlined_call_operand.vmem [shape: f32[32,128], index: 5, kind: input, shape index: {}]   ;;  %s1851_s6 = inlined_call_operand.vmem [shape: f32[32,128], index: 6, kind: input, shape index: {}]   ;;  %s1852_s7 = inlined_call_operand.hbm [shape: f32[1,128], index: 7, kind: input, shape index: {}]   ;;  %s1853_s8 = inlined_call_operand.vmem [shape: f32[32,128], index: 8, kind: input, shape index: {}]   ;;  %s1854_s9 = inlined_call_operand.hbm [shape: f32[1,128], index: 9, kind: input, shape index: {}]   ;;  %s1855_s10 = inlined_call_operand.vmem [shape: f32[2,32], index: 10, kind: input, shape index: {}]   ;;  %s1856_s11 = inlined_call_operand.vmem [shape: f32[2,32], index: 11, kind: input, shape index: {}]   ;;  %s1857_s12 = inlined_call_operand.hbm [shape: f32[16,128], index: 12, kind: output, shape index: {0}]   ;;  %s1858_s13 = inlined_call_operand.hbm [shape: f32[2,32], index: 13, kind: output, shape index: {1}]   ;;  %s1859_s14 = inlined_call_operand.hbm [shape: f32[2,32], index: 14, kind: output, shape index: {2}]  }
   0x1   :  { %21 = vsyncpa [#allocation3], 0 }
   0x2   :  { %22 = vsyncpa [#allocation8], 0 }
   0x3   :  { %23 = vsyncpa [#allocation4], 0 }
   0x4   :  { %24 = vsyncpa [#allocation11], 0  ;;  %s36_s15 = sshll.u32 %s1848_s3, 4  ;;  %s51_s18 = sshll.u32 %s1852_s7, 4  ;;  %s37_s15 = int_to_ptr.vmem [resolvable:$true] %s36_s15  ;;  %s52_s18 = int_to_ptr.hbm [resolvable:$true] %s51_s18 }
   0x5   :  { %s1457_s19 = smov [#allocation2]   ;;  %s1458_s20 = smov [#allocation6]  }
   0x6   :  { %39 = dma.vmem_to_smem %s37_s15, 128, %s1457_s19, [#allocation5]  }
   0x7   :  { %s53_s21 = sshll.u32 %s1458_s20, 4  ;;  %s64_s24 = sshll.u32 %s1854_s9, 4  ;;  %s54_s21 = int_to_ptr.vmem [resolvable:$true] %s53_s21  ;;  %s65_s24 = int_to_ptr.hbm [resolvable:$true] %s64_s24 }
   0x8   :  { %56 = dma.hbm_to_vmem [thread:$0]  %s52_s18, 16, %s54_s21, [#allocation3]  }
   0x9   :  { %s1459_s25 = smov [#allocation7]  }
   0xa   :  { %s66_s26 = sshll.u32 %s1459_s25, 4  ;;  %s67_s26 = int_to_ptr.vmem [resolvable:$true] %s66_s26 }
   0xb   :  { %69 = dma.hbm_to_vmem [thread:$0]  %s65_s24, 16, %s67_s26, [#allocation8]  }
   0xc   :  { %1447 = dma.done.wait [#allocation5], 128  }
   0xd   :  { %1448 = vsyncadd [#allocation5], 4294967168 }
   0xe   :  { %1449 = dma.done.wait [#allocation3], 16  }
   0xf   :  { %1450 = vsyncadd [#allocation3], 4294967280 }
  0x10   :  { %1451 = dma.done.wait [#allocation8], 16  }
  0x11   :  { %1452 = vsyncadd [#allocation8], 4294967280 }
  0x12   :  { %86 = sfence }
  0x13   :  { %v141_v0 = vld [vmem:[%s1846_s1] sm:$0xff]  ;;  %v143_v1 = vld [vmem:[%s1846_s1 + $0x10] sm:$0xf]  ;;  %v1460_v2 = vmov 0   ;;  %v98_v3 = vld [vmem:[%s1845_s0 + $0x8] sm:$0xff]  ;;  %v95_v14 = vlaneseq  ;;  %vm111_vm0 = vcmask 523264  }
  0x14   :  { %1246 = vset.pattern.permute.xlu0 %v1460_v2  ;;  %1247 = vset.pattern.permute.xlu1 %v1460_v2  ;;  %v94_v4 = vld [vmem:[%s1847_s2 + $0x38] sm:$0xff]  ;;  %v93_v5 = vld [vmem:[%s1847_s2 + $0x30] sm:$0xff]  ;;  %v92_v6 = vld [vmem:[%s1847_s2 + $0x28] sm:$0xff]  ;;  %v1461_v18 = vmov 0.0   ;;  %s1196_s20 = sld [smem:[#allocation2 + $0x1]]  ;;  %vm402_vm6 = vcmask 261120  }
  0x15   :  { %145 = vperm.xlu0 %1246, %v141_v0   ;;  %151 = vperm.xlu1 %1247, %v143_v1   ;;  %v91_v7 = vld [vmem:[%s1847_s2 + $0x20] sm:$0xff]  ;;  %v142_v8 = vld [vmem:[%s1846_s1 + $0x8] sm:$0xff]  ;;  %v90_v10 = vld [vmem:[%s1847_s2 + $0x18] sm:$0xff]  ;;  %v96_v15 = vand.u32 127, %v95_v14  ;;  %s197_s21 = sld [smem:[#allocation2]]  ;;  %vm216_vm8 = vcmask 1046528  }
  0x16   :  { %1248 = vset.pattern.permute.xlu2 %v1460_v2  ;;  %179 = vmatpush.msra.mxu1 %v94_v4  ;;  %v97_v9 = vld [vmem:[%s1845_s0] sm:$0xff]  ;;  %v89_v11 = vld [vmem:[%s1847_s2 + $0x10] sm:$0xff]  ;;  %v88_v12 = vld [vmem:[%s1847_s2 + $0x8] sm:$0xff]  ;;  %s1197_s22 = sld [smem:[#allocation2 + $0x3]]  ;;  %s1464_s3 = smov 96  }
  0x17   :  { %103 = vperm.xlu2 %1248, %v98_v3   ;;  %126 = vmatpush.msra.mxu0 %v94_v4  ;;  %v87_v13 = vld [vmem:[%s1847_s2] sm:$0xff]  ;;  %v401_v27 = vld [vmem:[%s1849_s4 + $0x18] sm:$0xff]  ;;  %v400_v28 = vld [vmem:[%s1849_s4 + $0x10] sm:$0xff]  ;;  %s1199_s23 = sld [smem:[#allocation2 + $0x81]]  ;;  %s1154_s17 = sshll.u32 %s1858_s13, 4  ;;  %s1155_s17 = int_to_ptr.hbm [resolvable:$true] %s1154_s17 }
  0x18   :  { %180 = vmatpush.msra.mxu1 %v93_v5  ;;  %421 = vmatpush.msra.mxu2 %v401_v27  ;;  %v399_v29 = vld [vmem:[%s1849_s4 + $0x8] sm:$0xff]  ;;  %v398_v30 = vld [vmem:[%s1849_s4] sm:$0xff]  ;;  %s1198_s24 = sld [smem:[#allocation2 + $0x80]]  ;;  %v435_v63 = vld [vmem:[%s1850_s5 + $0x18] sm:$0xff] }
  0x19   :  { %127 = vmatpush.msra.mxu0 %v93_v5  ;;  %1229 = vmatpush.msra.mxu3 %v401_v27  ;;  %s1200_s4 = sld [smem:[#allocation2 + $0x83]]  ;;  %v434_v2 = vld [vmem:[%s1850_s5 + $0x10] sm:$0xff] }
  0x1a   :  { %181 = vmatpush.msra.mxu1 %v92_v6  ;;  %422 = vmatpush.msra.mxu2 %v400_v28  ;;  %v201_v31 = vstv %s1196_s20  ;;  %s1623_s25 = sld [smem:[#allocation2 + $0x101]] }
  0x1b   :  { %128 = vmatpush.msra.mxu0 %v92_v6  ;;  %1230 = vmatpush.msra.mxu3 %v400_v28  ;;  %v198_v33 = vstv %s197_s21  ;;  %s1635_s1 = sld [smem:[#allocation2 + $0x100]]  ;;  %s1165_s21 = sshll.u32 %s1859_s14, 4  ;;  %s1166_s21 = int_to_ptr.hbm [resolvable:$true] %s1165_s21 }
  0x1c   :  { %182 = vmatpush.msra.mxu1 %v91_v7  ;;  %423 = vmatpush.msra.mxu2 %v399_v29  ;;  %v1610_v37 = vstv %s1197_s22  ;;  %s1203_s28 = sld [smem:[#allocation2 + $0x102]]  ;;  %s1467_s22 = smov [#allocation9]  }
  0x1d   :  { %148 = vperm.xlu0 %1246, %v142_v8   ;;  %100 = vperm.xlu1 %1247, %v97_v9   ;;  %v1613_v43 = vstv %s1199_s23  ;;  %v433_v9 = vld [vmem:[%s1850_s5 + $0x8] sm:$0xff]  ;;  %s1667_s30 = sld [smem:[#allocation2 + $0x201]]  ;;  %s1469_s14 = smov 8  }
  0x1e   :  { %183 = vmatpush.msra.mxu1 %v90_v10  ;;  %129 = vmatpush.msra.mxu0 %v91_v7  ;;  %v1616_v46 = vstv %s1198_s24  ;;  %s1700_s23 = sld [smem:[#allocation2 + $0x200]]  ;;  %s1140_s24 = sshll.u32 %s1857_s12, 4  ;;  %s1141_s24 = int_to_ptr.hbm [resolvable:$true] %s1140_s24 }
  0x1f   :  { %1231 = vmatpush.msra.mxu3 %v399_v29  ;;  %424 = vmatpush.msra.mxu2 %v398_v30  ;;  %v1621_v55 = vstv %s1200_s4  ;;  %s1462_s4 = smov 32  }
  0x20   :  { %184 = vmatpush.msra.mxu1 %v89_v11  ;;  %130 = vmatpush.msra.mxu0 %v90_v10 }
  0x21   :  { %1232 = vmatpush.msra.mxu3 %v398_v30 }
  0x22   :  { %131 = vmatpush.msra.mxu0 %v89_v11  ;;  %185 = vmatpush.msra.mxu1 %v88_v12 }
  0x23   :  { %455 = vmatpush.msrb.mxu3 %v435_v63  ;;  %v1674_v63 = vld [vmem:[%s1851_s6 + $0x18] sm:$0xff] }
  0x24   :  { %132 = vmatpush.msra.mxu0 %v88_v12  ;;  %186 = vmatpush.msra.mxu1 %v87_v13 }
  0x25   :  { %456 = vmatpush.msrb.mxu3 %v434_v2  ;;  %566 = vmatpush.msrb.mxu2 %v1674_v63 }
  0x26   :  { %133 = vmatpush.msra.mxu0 %v87_v13  ;;  %982 = vmatpush.msrb.mxu1 %v1674_v63 }
  0x27   :  { %457 = vmatpush.msrb.mxu3 %v433_v9 }
  0x28   :  { %706 = vmatpush.msrb.mxu0 %v1674_v63 }
  0x71   :  { %v104_v24 = vpop.permute.xlu2 %103 }
  0x72   :  { %vm106_vm5 = vcmp.eq.s32.totalorder %v96_v15, %v104_v24 }
  0x73   :  { %v1187_v26 = vsel %vm106_vm5, 1.0, %v1461_v18 }
  0x87   :  { %v146_v16 = vpop.permute.xlu0 %145  ;;  %v152_v17 = vpop.permute.xlu1 %151 }
  0x88   :  { %vm153_vm1 = vcmp.eq.s32.totalorder %v96_v15, %v146_v16  ;;  %vm155_vm4 = vcmp.eq.s32.totalorder %v96_v15, %v152_v17  ;;  %v1647_v17 = vstv %s1623_s25 }
  0x89   :  { %v1190_v19 = vsel %vm153_vm1, 1.0, %v1461_v18  ;;  %v1192_v25 = vsel %vm155_vm4, 1.0, %v1461_v18 }
  0x8a   :  { %1193 = vmatmul.msk.f32.vlgmr.msra.gmra.mxu1 %vm111_vm0, %v1190_v19 }
  0x8f   :  { %v149_v20 = vpop.permute.xlu0 %148  ;;  %v101_v21 = vpop.permute.xlu1 %100 }
  0x90   :  { %vm154_vm2 = vcmp.eq.s32.totalorder %v96_v15, %v149_v20  ;;  %vm105_vm3 = vcmp.eq.s32.totalorder %v96_v15, %v101_v21  ;;  %v432_v15 = vld [vmem:[%s1850_s5] sm:$0xff]  ;;  %s1204_s5 = sld [smem:[#allocation2 + $0x103]] }
  0x91   :  { %v1191_v22 = vsel %vm154_vm2, 1.0, %v1461_v18  ;;  %v1186_v23 = vsel %vm105_vm3, 1.0, %v1461_v18  ;;  %458 = vmatpush.msrb.mxu3 %v432_v15 }
  0x92   :  { %1194 = vmatmul.msk.f32.gmra.mxu1 %vm111_vm0, %v1191_v22  ;;  %1188 = vmatmul.msk.f32.vlgmr.msra.gmra.mxu0 %vm111_vm0, %v1186_v23 }
  0x96   :  { %v317_v2 = vstv %s1204_s5  ;;  %s1465_s5 = smov [#allocation10]  }
  0x9a   :  { %1195 = vmatmul.msk.f32.gmra.mxu1 %vm111_vm0, %v1192_v25  ;;  %1189 = vmatmul.msk.f32.gmra.mxu0 %vm111_vm0, %v1187_v26 }
 0x107   :  { %v188_v32 = vpop.f32.mrf.mxu1 }
 0x108   :  { %v202_v34 = vmul.f32 %v201_v31, %v188_v32  ;;  %v199_v35 = vmul.f32 %v198_v33, %v188_v32  ;;  %v310_v32 = vstv %s1203_s28 }
 0x10a   :  { %v204_v36 = vrot.slane %v202_v34, 1 }
 0x10c   :  { %v206_v38 = vadd.f32 %v204_v36, %v199_v35 }
 0x10e   :  { %v209_v39 = vadd.f32 %v1610_v37, %v206_v38 }
 0x10f   :  { %v191_v40 = vpop.f32.mrf.mxu1  ;;  %v135_v41 = vpop.f32.mrf.mxu0 }
 0x110   :  { %vm210_vm7 = vcmp.gt.f32.partialorder %v209_v39, 0.0  ;;  %v211_v42 = vmul.f32 0.01, %v209_v39  ;;  %v214_v44 = vmul.f32 %v201_v31, %v191_v40  ;;  %1208 = vmatmul.msk.f32.vlgmr.msra.gmra.mxu2 %vm402_vm6, %v135_v41  ;;  %v213_v47 = vmul.f32 %v198_v33, %v191_v40 }
 0x112   :  { %v212_v45 = vsel %vm210_vm7, %v209_v39, %v211_v42  ;;  %v217_v48 = vrot.slane %v214_v44, 1 }
 0x113   :  { %v251_v49 = vmul.f32 %v1613_v43, %v212_v45  ;;  %v248_v52 = vmul.f32 %v1616_v46, %v212_v45 }
 0x114   :  { %v218_v50 = vsel %vm216_vm8, %v204_v36, %v217_v48  ;;  %v222_v51 = vadd.f32 %v217_v48, %v213_v47 }
 0x115   :  { %v253_v53 = vrot.slane %v251_v49, 1  ;;  %v221_v54 = vadd.f32 %v218_v50, %v199_v35 }
 0x116   :  { %v224_v56 = vadd.f32 %v222_v51, %v1610_v37 }
 0x117   :  { %v255_v57 = vadd.f32 %v253_v53, %v248_v52  ;;  %v223_v58 = vadd.f32 %v221_v54, %v1610_v37  ;;  %v194_v59 = vpop.f32.mrf.mxu1  ;;  %v138_v62 = vpop.f32.mrf.mxu0 }
 0x118   :  { %vm226_vm9 = vcmp.gt.f32.partialorder %v224_v56, 0.0  ;;  %v228_v60 = vmul.f32 0.01, %v224_v56  ;;  %v232_v61 = vmul.f32 %v201_v31, %v194_v59  ;;  %1209 = vmatmul.msk.f32.vlgmr.msra.gmra.mxu3 %vm402_vm6, %v138_v62  ;;  %v231_v4 = vmul.f32 %v198_v33, %v194_v59 }
 0x119   :  { %v258_v0 = vadd.f32 %v1621_v55, %v255_v57  ;;  %vm225_vm10 = vcmp.gt.f32.partialorder %v223_v58, 0.0  ;;  %v227_v1 = vmul.f32 0.01, %v223_v58  ;;  %v1657_v31 = vstv %s1635_s1  ;;  %499 = vmatpush.msra.mxu3 %v1674_v63 }
 0x11a   :  { %v230_v3 = vsel %vm226_vm9, %v224_v56, %v228_v60  ;;  %v234_v5 = vrot.slane %v232_v61, 1 }
 0x11b   :  { %vm259_vm11 = vcmp.gt.f32.partialorder %v258_v0, 0.0  ;;  %v260_v6 = vmul.f32 0.01, %v258_v0  ;;  %v229_v7 = vsel %vm225_vm10, %v223_v58, %v227_v1  ;;  %v264_v8 = vmul.f32 %v1613_v43, %v230_v3 }
 0x11c   :  { %v263_v10 = vmul.f32 %v1613_v43, %v229_v7  ;;  %v236_v11 = vadd.f32 %v234_v5, %v213_v47  ;;  %v276_v13 = vmul.f32 %v1616_v46, %v230_v3  ;;  %v237_v14 = vadd.f32 %v234_v5, %v231_v4 }
 0x11d   :  { %v268_v12 = vrot.slane %v264_v8, 1  ;;  %v261_v16 = vsel %vm259_vm11, %v258_v0, %v260_v6  ;;  %v262_v19 = vmul.f32 %v1616_v46, %v229_v7  ;;  %v1679_v0 = vld [vmem:[%s1851_s6 + $0x10] sm:$0xff]  ;;  %vm396_vm10 = vcmask 1040384  }
 0x11e   :  { %v267_v18 = vrot.slane %v263_v10, 1  ;;  %v238_v21 = vadd.f32 %v236_v11, %v1610_v37  ;;  %v239_v22 = vadd.f32 %v237_v14, %v1610_v37  ;;  %v304_v24 = vmul.f32 %v1647_v17, %v261_v16  ;;  %500 = vmatpush.msra.mxu3 %v1679_v0  ;;  %567 = vmatpush.msrb.mxu2 %v1679_v0  ;;  %v1695_v11 = vld [vmem:[%s1851_s6] sm:$0xff] }
 0x11f   :  { %v278_v20 = vadd.f32 %v276_v13, %v268_v12  ;;  %v301_v39 = vmul.f32 %v1657_v31, %v261_v16  ;;  %v311_v40 = vmul.f32 %v310_v32, %v261_v16  ;;  %707 = vmatpush.msrb.mxu0 %v1679_v0  ;;  %983 = vmatpush.msrb.mxu1 %v1679_v0 }
 0x120   :  { %v269_v23 = vsel %vm216_vm8, %v267_v18, %v268_v12  ;;  %vm241_vm12 = vcmp.gt.f32.partialorder %v239_v22, 0.0  ;;  %v242_v27 = vmul.f32 0.01, %v238_v21  ;;  %v243_v28 = vmul.f32 0.01, %v239_v22 }
 0x121   :  { %v271_v25 = vadd.f32 %v269_v23, %v262_v19  ;;  %v279_v26 = vadd.f32 %v278_v20, %v1621_v55  ;;  %vm240_vm14 = vcmp.gt.f32.partialorder %v238_v21, 0.0  ;;  %v306_v34 = vrot.slane %v304_v24, 1  ;;  %v483_v20 = vld [vmem:[%s1856_s11] sm:$0x3]  ;;  %s1207_s11 = sld [smem:[#allocation2 + $0x203]] }
 0x122   :  { %v245_v33 = vsel %vm241_vm12, %v239_v22, %v243_v28  ;;  %v244_v38 = vsel %vm240_vm14, %v238_v21, %v242_v27  ;;  %v313_v54 = vrot.slane %v311_v40, 2  ;;  %v371_v19 = vstv %s1667_s30  ;;  %529 = vrot.lane.b32.xlu0 %v483_v20, %s1462_s4  ;;  %s1152_s30 = sshll.u32 %s1465_s5, 4  ;;  %s1153_s30 = int_to_ptr.vmem [resolvable:$true] %s1152_s30 }
 0x123   :  { %v272_v29 = vadd.f32 %v271_v25, %v1621_v55  ;;  %vm280_vm13 = vcmp.gt.f32.partialorder %v279_v26, 0.0  ;;  %v281_v30 = vmul.f32 0.01, %v279_v26  ;;  %v285_v42 = vmul.f32 %v1613_v43, %v245_v33 }
 0x124   :  { %v283_v47 = vmul.f32 %v1616_v46, %v244_v38  ;;  %v284_v48 = vmul.f32 %v1616_v46, %v245_v33  ;;  %v308_v50 = vadd.f32 %v306_v34, %v301_v39 }
 0x125   :  { %vm273_vm15 = vcmp.gt.f32.partialorder %v272_v29, 0.0  ;;  %v274_v35 = vmul.f32 0.01, %v272_v29  ;;  %v282_v36 = vsel %vm280_vm13, %v279_v26, %v281_v30  ;;  %v287_v49 = vrot.slane %v285_v42, 1 }
 0x126   :  { %v338_v37 = vmul.f32 %v1647_v17, %v282_v36  ;;  %v337_v58 = vmul.f32 %v1657_v31, %v282_v36  ;;  %v343_v59 = vmul.f32 %v310_v32, %v282_v36  ;;  %v315_v62 = vadd.f32 %v313_v54, %v308_v50  ;;  %v1249_v54 = vld [vmem:[#allocation6] ss:$0 sm:$0xff] }
 0x127   :  { %v275_v41 = vsel %vm273_vm15, %v272_v29, %v274_v35  ;;  %v289_v56 = vadd.f32 %v287_v49, %v283_v47  ;;  %v290_v57 = vadd.f32 %v287_v49, %v284_v48  ;;  %v368_v30 = vstv %s1700_s23  ;;  %s1138_s23 = sshll.u32 %s1467_s22, 4  ;;  %s1139_s23 = int_to_ptr.vmem [resolvable:$true] %s1138_s23 }
 0x128   :  { %v323_v44 = vmul.f32 %v1647_v17, %v275_v41  ;;  %v328_v45 = vmul.f32 %v310_v32, %v275_v41  ;;  %v322_v51 = vmul.f32 %v1657_v31, %v275_v41  ;;  %v340_v53 = vrot.slane %v338_v37, 1 }
 0x129   :  { %v291_v61 = vadd.f32 %v289_v56, %v1621_v55  ;;  %v292_v46 = vadd.f32 %v290_v57, %v1621_v55  ;;  %v1685_v55 = vld [vmem:[%s1851_s6 + $0x8] sm:$0xff]  ;;  %v345_v6 = vrot.slane %v343_v59, 2  ;;  %v318_v10 = vadd.f32 %v317_v2, %v315_v62 }
 0x12a   :  { %v325_v52 = vrot.slane %v323_v44, 1  ;;  %v330_v60 = vrot.slane %v328_v45, 2  ;;  %v342_v1 = vadd.f32 %v340_v53, %v337_v58  ;;  %501 = vmatpush.msra.mxu3 %v1685_v55  ;;  %568 = vmatpush.msrb.mxu2 %v1685_v55  ;;  %v378_v38 = vstv %s1207_s11 }
 0x12b   :  { %vm293_vm0 = vcmp.gt.f32.partialorder %v291_v61, 0.0  ;;  %vm294_vm1 = vcmp.gt.f32.partialorder %v292_v46, 0.0  ;;  %v295_v4 = vmul.f32 0.01, %v291_v61  ;;  %v296_v5 = vmul.f32 0.01, %v292_v46  ;;  %708 = vmatpush.msrb.mxu0 %v1685_v55  ;;  %984 = vmatpush.msrb.mxu1 %v1685_v55 }
 0x12c   :  { %v327_v43 = vadd.f32 %v325_v52, %v322_v51  ;;  %v347_v14 = vadd.f32 %v345_v6, %v342_v1  ;;  %502 = vmatpush.msra.mxu3 %v1695_v11  ;;  %569 = vmatpush.msrb.mxu2 %v1695_v11  ;;  %v320_v23 = vmul.f32 0.01, %v318_v10  ;;  %vm319_vm3 = vcmp.gt.f32.partialorder %v318_v10, 0.0  ;;  %v482_v52 = vld [vmem:[%s1855_s10] sm:$0x3]  ;;  %s1463_s10 = smov 64  }
 0x12d   :  { %v297_v8 = vsel %vm293_vm0, %v291_v61, %v295_v4  ;;  %v298_v9 = vsel %vm294_vm1, %v292_v46, %v296_v5  ;;  %709 = vmatpush.msrb.mxu0 %v1695_v11  ;;  %985 = vmatpush.msrb.mxu1 %v1695_v11 }
 0x12e   :  { %v332_v3 = vadd.f32 %v330_v60, %v327_v43  ;;  %v353_v12 = vmul.f32 %v1647_v17, %v298_v9  ;;  %v358_v13 = vmul.f32 %v310_v32, %v298_v9  ;;  %v352_v16 = vmul.f32 %v1657_v31, %v297_v8  ;;  %776 = vmatpush.msra.mxu2 %v1674_v63 }
 0x12f   :  { %v348_v24 = vadd.f32 %v347_v14, %v317_v2  ;;  %912 = vmatpush.msra.mxu0 %v1674_v63  ;;  %v321_v27 = vsel %vm319_vm3, %v318_v10, %v320_v23 }
 0x130   :  { %v333_v7 = vadd.f32 %v332_v3, %v317_v2  ;;  %v355_v18 = vrot.slane %v353_v12, 1  ;;  %v360_v22 = vrot.slane %v358_v13, 2  ;;  %777 = vmatpush.msra.mxu2 %v1679_v0  ;;  %v369_v33 = vmul.f32 %v368_v30, %v321_v27 }
 0x131   :  { %913 = vmatpush.msra.mxu0 %v1679_v0  ;;  %v350_v28 = vmul.f32 0.01, %v348_v24  ;;  %vm349_vm4 = vcmp.gt.f32.partialorder %v348_v24, 0.0 }
 0x132   :  { %vm334_vm2 = vcmp.gt.f32.partialorder %v333_v7, 0.0  ;;  %v335_v15 = vmul.f32 0.01, %v333_v7  ;;  %v357_v21 = vadd.f32 %v355_v18, %v352_v16  ;;  %778 = vmatpush.msra.mxu2 %v1685_v55 }
 0x133   :  { %914 = vmatpush.msra.mxu0 %v1685_v55  ;;  %v351_v34 = vsel %vm349_vm4, %v348_v24, %v350_v28 }
 0x134   :  { %v336_v17 = vsel %vm334_vm2, %v333_v7, %v335_v15  ;;  %v362_v26 = vadd.f32 %v360_v22, %v357_v21  ;;  %779 = vmatpush.msra.mxu2 %v1695_v11  ;;  %v383_v39 = vmul.f32 %v368_v30, %v351_v34 }
 0x135   :  { %v372_v25 = vmul.f32 %v371_v19, %v336_v17  ;;  %915 = vmatpush.msra.mxu0 %v1695_v11 }
 0x136   :  { %v363_v29 = vadd.f32 %v362_v26, %v317_v2 }
 0x137   :  { %v374_v31 = vrot.slane %v372_v25, 5 }
 0x138   :  { %vm364_vm5 = vcmp.gt.f32.partialorder %v363_v29, 0.0  ;;  %v365_v32 = vmul.f32 0.01, %v363_v29 }
 0x139   :  { %v376_v36 = vadd.f32 %v374_v31, %v369_v33 }
 0x13a   :  { %v366_v35 = vsel %vm364_vm5, %v363_v29, %v365_v32 }
 0x13b   :  { %v384_v37 = vmul.f32 %v371_v19, %v366_v35  ;;  %v379_v41 = vadd.f32 %v378_v38, %v376_v36 }
 0x13d   :  { %v386_v40 = vrot.slane %v384_v37, 5  ;;  %v381_v45 = vmul.f32 0.01, %v379_v41  ;;  %vm380_vm9 = vcmp.gt.f32.partialorder %v379_v41, 0.0 }
 0x13f   :  { %v388_v42 = vadd.f32 %v386_v40, %v383_v39  ;;  %v382_v50 = vsel %vm380_vm9, %v379_v41, %v381_v45  ;;  %vm1073_vm9 = vcmask 1041408  }
 0x141   :  { %v389_v44 = vadd.f32 %v388_v42, %v378_v38 }
 0x143   :  { %vm390_vm7 = vcmp.gt.f32.partialorder %v389_v44, 0.0  ;;  %v391_v47 = vmul.f32 0.01, %v389_v44 }
 0x145   :  { %v392_v48 = vsel %vm390_vm7, %v389_v44, %v391_v47 }
 0x146   :  { %v394_v49 = vrot.slane %v392_v48, 1 }
 0x148   :  { %v397_v51 = vsel %vm396_vm10, %v382_v50, %v394_v49 }
 0x149   :  { %1210 = vmatmul.msk.f32.vlgmr.msrb.gmra.mxu3 %vm402_vm6, %v397_v51 }
 0x14a   :  { %636 = vmatpush.msrb.mxu3 %v1674_v63 }
 0x14c   :  { %637 = vmatpush.msrb.mxu3 %v1679_v0 }
 0x14e   :  { %638 = vmatpush.msrb.mxu3 %v1685_v55 }
 0x150   :  { %639 = vmatpush.msrb.mxu3 %v1695_v11 }
 0x151   :  { %1211 = vmatmul.msk.f32.vlgmr.msra.gmra.mxu3 %vm402_vm6, %v482_v52 }
 0x152   :  { %842 = vmatpush.msra.mxu3 %v1674_v63 }
 0x154   :  { %843 = vmatpush.msra.mxu3 %v1679_v0 }
 0x156   :  { %844 = vmatpush.msra.mxu3 %v1685_v55 }
 0x158   :  { %845 = vmatpush.msra.mxu3 %v1695_v11 }
 0x193   :  { %v1749_v46 = vpop.f32.mrf.mxu2 }
 0x194   :  { %v530_v19 = vpop.permute.xlu0 %529 }
 0x19b   :  { %v429_v53 = vpop.f32.mrf.mxu3 }
 0x1cc   :  { %v460_v56 = vpop.f32.mrf.mxu3 }
 0x1cd   :  { %v1739_v57 = vadd.f32 %v1249_v54, %v460_v56 }
 0x1cf   :  { %v465_v58 = vrot.slane %v1739_v57, 6  ;;  %v468_v59 = vrot.slane %v1739_v57, 4  ;;  %v471_v43 = vrot.slane %v1739_v57, 2  ;;  %v1745_v60 = vadd.f32 %v1739_v57, %v429_v53 }
 0x1d0   :  { %v463_v0 = vadd.f32 %v1739_v57, %v1749_v46 }
 0x1d1   :  { %v1747_v61 = vadd.f32 %v465_v58, %v429_v53  ;;  %v1753_v62 = vadd.f32 %v468_v59, %v429_v53  ;;  %v1757_v63 = vadd.f32 %v471_v43, %v429_v53  ;;  %v467_v27 = vadd.f32 %v465_v58, %v1749_v46 }
 0x1d4   :  { %v504_v1 = vpop.f32.mrf.mxu3 }
 0x1d5   :  { %v507_v2 = vadd.f32 %v504_v1, %v463_v0  ;;  %v470_v1 = vadd.f32 %v468_v59, %v1749_v46 }
 0x1d7   :  { %1251 = vtanh.f32 %v507_v2  ;;  %v1212_v55 = vmul.f32 -1.442695, %v507_v2 }
 0x1d9   :  { %1253 = vpow2.f32 %v1212_v55 }
 0x1dd   :  { %v1252_v3 = vpop.eup %1251 }
 0x1de   :  { %534 = vrot.lane.b32.xlu2 %v1252_v3, %s1462_s4 }
 0x1df   :  { %v1254_v4 = vpop.eup %1253 }
 0x1e0   :  { %v511_v5 = vadd.f32 1.0, %v1254_v4 }
 0x1e2   :  { %1255 = vrcp.f32 %v511_v5  ;;  %v523_v11 = vand.u32 2147483648, %v511_v5  ;;  %vm517_vm12 = vweird.f32 %v511_v5  ;;  %v521_v12 = vand.u32 2147483647, %v511_v5 }
 0x1e4   :  { %v524_v14 = vor.u32 1.1754944e-38, %v523_v11  ;;  %vm522_vm14 = vcmp.eq.f32.partialorder %v521_v12, 8.507059e+37 }
 0x1e8   :  { %v1256_v6 = vpop.eup %1255 }
 0x1e9   :  { %v513_v7 = vmul.f32 %v1256_v6, %v511_v5  ;;  %vm518_vm11 = vweird.f32 %v1256_v6 }
 0x1ea   :  { %vm519_vm13 = vmor %vm517_vm12, %vm518_vm11 }
 0x1eb   :  { %v514_v8 = vsub.f32 1.0, %v513_v7 }
 0x1ed   :  { %v515_v9 = vmul.f32 %v1256_v6, %v514_v8 }
 0x1ef   :  { %v516_v10 = vadd.f32 %v1256_v6, %v515_v9 }
 0x1f1   :  { %v520_v13 = vsel %vm519_vm13, %v1256_v6, %v516_v10 }
 0x1f2   :  { %v525_v15 = vsel %vm522_vm14, %v524_v14, %v520_v13  ;;  %vm1075_vm14 = vcmask 1042432  }
 0x1f3   :  { %v532_v17 = vmul.f32 %v530_v19, %v525_v15 }
 0x238   :  { %v535_v16 = vpop.permute.xlu2 %534 }
 0x239   :  { %v537_v18 = vmul.f32 %v535_v16, %v525_v15 }
 0x23b   :  { %539 = vrot.lane.b32.xlu1 %v537_v18, %s1462_s4 }
 0x2ad   :  { %v540_v20 = vpop.permute.xlu1 %539 }
 0x2ae   :  { %v542_v21 = vadd.f32 %v540_v20, %v532_v17 }
 0x2b0   :  { %1257 = vtanh.f32 %v542_v21  ;;  %v599_v48 = vrot.slane %v542_v21, 6 }
 0x2b6   :  { %v1258_v22 = vpop.eup %1257 }
 0x2b7   :  { %545 = vrot.lane.b32.xlu2 %v1258_v22, %s1462_s4 }
 0x311   :  { %v546_v23 = vpop.permute.xlu2 %545 }
 0x312   :  { %v1764_v24 = vmul.f32 %v546_v23, %v525_v15 }
 0x314   :  { %550 = vrot.lane.b32.xlu0 %v1764_v24, %s1463_s10 }
 0x386   :  { %v551_v25 = vpop.permute.xlu0 %550 }
 0x387   :  { %1213 = vmatmul.msk.f32.vlgmr.msrb.gmra.mxu2 %vm402_vm6, %v551_v25 }
 0x40a   :  { %v571_v26 = vpop.f32.mrf.mxu2 }
 0x40b   :  { %v575_v28 = vrot.slane %v571_v26, 6 }
 0x40d   :  { %v577_v29 = vadd.f32 %v575_v28, %v467_v27  ;;  %v1059_v27 = vrot.slane %v1764_v24, 1 }
 0x40f   :  { %1259 = vtanh.f32 %v577_v29  ;;  %v1214_v31 = vmul.f32 -1.442695, %v577_v29 }
 0x411   :  { %1261 = vpow2.f32 %v1214_v31 }
 0x415   :  { %v1260_v30 = vpop.eup %1259 }
 0x416   :  { %603 = vrot.lane.b32.xlu1 %v1260_v30, %s1462_s4 }
 0x417   :  { %v1262_v32 = vpop.eup %1261 }
 0x418   :  { %v581_v33 = vadd.f32 1.0, %v1262_v32 }
 0x41a   :  { %1263 = vrcp.f32 %v581_v33  ;;  %v593_v39 = vand.u32 2147483648, %v581_v33  ;;  %vm587_vm0 = vweird.f32 %v581_v33  ;;  %v591_v40 = vand.u32 2147483647, %v581_v33 }
 0x41c   :  { %v594_v42 = vor.u32 1.1754944e-38, %v593_v39  ;;  %vm592_vm2 = vcmp.eq.f32.partialorder %v591_v40, 8.507059e+37 }
 0x420   :  { %v1264_v34 = vpop.eup %1263 }
 0x421   :  { %v583_v35 = vmul.f32 %v1264_v34, %v581_v33  ;;  %vm588_vm15 = vweird.f32 %v1264_v34 }
 0x422   :  { %vm589_vm1 = vmor %vm587_vm0, %vm588_vm15 }
 0x423   :  { %v584_v36 = vsub.f32 1.0, %v583_v35 }
 0x425   :  { %v585_v37 = vmul.f32 %v1264_v34, %v584_v36 }
 0x427   :  { %v586_v38 = vadd.f32 %v1264_v34, %v585_v37  ;;  %v473_v37 = vadd.f32 %v471_v43, %v1749_v46 }
 0x429   :  { %v590_v41 = vsel %vm589_vm1, %v1264_v34, %v586_v38 }
 0x42a   :  { %v595_v45 = vsel %vm592_vm2, %v594_v42, %v590_v41 }
 0x42b   :  { %v601_v49 = vmul.f32 %v599_v48, %v595_v45 }
 0x488   :  { %v604_v44 = vpop.permute.xlu1 %603 }
 0x489   :  { %v606_v47 = vmul.f32 %v604_v44, %v595_v45 }
 0x48b   :  { %608 = vrot.lane.b32.xlu2 %v606_v47, %s1462_s4 }
 0x4e5   :  { %v609_v50 = vpop.permute.xlu2 %608 }
 0x4e6   :  { %v611_v51 = vadd.f32 %v609_v50, %v601_v49 }
 0x4e8   :  { %1265 = vtanh.f32 %v611_v51  ;;  %v669_v19 = vrot.slane %v611_v51, 6 }
 0x4ee   :  { %v1266_v52 = vpop.eup %1265 }
 0x4ef   :  { %614 = vrot.lane.b32.xlu0 %v1266_v52, %s1462_s4 }
 0x561   :  { %v615_v53 = vpop.permute.xlu0 %614 }
 0x562   :  { %v617_v54 = vmul.f32 %v615_v53, %v595_v45 }
 0x564   :  { %v619_v56 = vrot.slane %v617_v54, 2  ;;  %v1045_v23 = vrot.slane %v617_v54, 1 }
 0x566   :  { %620 = vrot.lane.b32.xlu1 %v619_v56, %s1463_s10  ;;  %v1072_v31 = vsel %vm396_vm10, %v1764_v24, %v1045_v23  ;;  %v1084_v32 = vsel %vm396_vm10, %v1059_v27, %v619_v56 }
 0x5d8   :  { %v621_v58 = vpop.permute.xlu1 %620 }
 0x5d9   :  { %1215 = vmatmul.msk.f32.vlgmr.msrb.gmra.mxu3 %vm402_vm6, %v621_v58 }
 0x65c   :  { %v641_v0 = vpop.f32.mrf.mxu3 }
 0x65d   :  { %v645_v2 = vrot.slane %v641_v0, 4 }
 0x65f   :  { %v647_v3 = vadd.f32 %v645_v2, %v470_v1 }
 0x661   :  { %1267 = vtanh.f32 %v647_v3  ;;  %v1216_v4 = vmul.f32 -1.442695, %v647_v3 }
 0x663   :  { %1269 = vpow2.f32 %v1216_v4 }
 0x667   :  { %v1268_v55 = vpop.eup %1267 }
 0x668   :  { %673 = vrot.lane.b32.xlu2 %v1268_v55, %s1462_s4 }
 0x669   :  { %v1270_v5 = vpop.eup %1269 }
 0x66a   :  { %v651_v6 = vadd.f32 1.0, %v1270_v5 }
 0x66c   :  { %1271 = vrcp.f32 %v651_v6  ;;  %v663_v12 = vand.u32 2147483648, %v651_v6  ;;  %vm657_vm4 = vweird.f32 %v651_v6  ;;  %v661_v59 = vand.u32 2147483647, %v651_v6 }
 0x66e   :  { %v664_v14 = vor.u32 1.1754944e-38, %v663_v12  ;;  %vm662_vm7 = vcmp.eq.f32.partialorder %v661_v59, 8.507059e+37 }
 0x672   :  { %v1272_v7 = vpop.eup %1271 }
 0x673   :  { %v653_v8 = vmul.f32 %v1272_v7, %v651_v6  ;;  %vm658_vm3 = vweird.f32 %v1272_v7 }
 0x674   :  { %vm659_vm5 = vmor %vm657_vm4, %vm658_vm3  ;;  %vm1077_vm3 = vcmask 1043456  }
 0x675   :  { %v654_v9 = vsub.f32 1.0, %v653_v8 }
 0x677   :  { %v655_v10 = vmul.f32 %v1272_v7, %v654_v9 }
 0x679   :  { %v656_v11 = vadd.f32 %v1272_v7, %v655_v10 }
 0x67b   :  { %v660_v13 = vsel %vm659_vm5, %v1272_v7, %v656_v11 }
 0x67c   :  { %v665_v16 = vsel %vm662_vm7, %v664_v14, %v660_v13 }
 0x67d   :  { %v671_v17 = vmul.f32 %v669_v19, %v665_v16 }
 0x6c2   :  { %v674_v15 = vpop.permute.xlu2 %673 }
 0x6c3   :  { %v676_v18 = vmul.f32 %v674_v15, %v665_v16 }
 0x6c5   :  { %678 = vrot.lane.b32.xlu0 %v676_v18, %s1462_s4 }
 0x737   :  { %v679_v20 = vpop.permute.xlu0 %678 }
 0x738   :  { %v681_v21 = vadd.f32 %v679_v20, %v671_v17 }
 0x73a   :  { %1273 = vtanh.f32 %v681_v21  ;;  %v739_v54 = vrot.slane %v681_v21, 6 }
 0x740   :  { %v1274_v22 = vpop.eup %1273 }
 0x741   :  { %684 = vrot.lane.b32.xlu1 %v1274_v22, %s1462_s4 }
 0x7b3   :  { %v685_v25 = vpop.permute.xlu1 %684 }
 0x7b4   :  { %v687_v26 = vmul.f32 %v685_v25, %v665_v16 }
 0x7b6   :  { %v1047_v28 = vrot.slane %v687_v26, 2  ;;  %v1062_v29 = vrot.slane %v687_v26, 3  ;;  %v689_v30 = vrot.slane %v687_v26, 4 }
 0x7b8   :  { %v1074_v33 = vsel %vm1073_vm9, %v1072_v31, %v1047_v28  ;;  %v1085_v34 = vsel %vm1073_vm9, %v1084_v32, %v1062_v29  ;;  %690 = vrot.lane.b32.xlu2 %v689_v30, %s1463_s10 }
 0x812   :  { %v691_v35 = vpop.permute.xlu2 %690 }
 0x813   :  { %1217 = vmatmul.msk.f32.vlgmr.msrb.gmra.mxu0 %vm402_vm6, %v691_v35 }
 0x890   :  { %v711_v36 = vpop.f32.mrf.mxu0 }
 0x891   :  { %v715_v38 = vrot.slane %v711_v36, 2 }
 0x893   :  { %v717_v39 = vadd.f32 %v715_v38, %v473_v37 }
 0x895   :  { %1275 = vtanh.f32 %v717_v39  ;;  %v1218_v24 = vmul.f32 -1.442695, %v717_v39 }
 0x897   :  { %1277 = vpow2.f32 %v1218_v24 }
 0x89b   :  { %v1276_v40 = vpop.eup %1275 }
 0x89c   :  { %743 = vrot.lane.b32.xlu0 %v1276_v40, %s1462_s4 }
 0x89d   :  { %v1278_v41 = vpop.eup %1277 }
 0x89e   :  { %v721_v42 = vadd.f32 1.0, %v1278_v41 }
 0x8a0   :  { %1279 = vrcp.f32 %v721_v42  ;;  %v733_v50 = vand.u32 2147483648, %v721_v42  ;;  %vm727_vm11 = vweird.f32 %v721_v42  ;;  %v731_v57 = vand.u32 2147483647, %v721_v42 }
 0x8a2   :  { %v734_v46 = vor.u32 1.1754944e-38, %v733_v50  ;;  %vm732_vm13 = vcmp.eq.f32.partialorder %v731_v57, 8.507059e+37 }
 0x8a6   :  { %v1280_v44 = vpop.eup %1279 }
 0x8a7   :  { %v723_v45 = vmul.f32 %v1280_v44, %v721_v42  ;;  %vm728_vm10 = vweird.f32 %v1280_v44 }
 0x8a8   :  { %vm729_vm12 = vmor %vm727_vm11, %vm728_vm10  ;;  %vm1079_vm10 = vcmask 1044480  }
 0x8a9   :  { %v724_v47 = vsub.f32 1.0, %v723_v45 }
 0x8ab   :  { %v725_v48 = vmul.f32 %v1280_v44, %v724_v47 }
 0x8ad   :  { %v726_v49 = vadd.f32 %v1280_v44, %v725_v48 }
 0x8af   :  { %v730_v43 = vsel %vm729_vm12, %v1280_v44, %v726_v49 }
 0x8b0   :  { %v735_v52 = vsel %vm732_vm13, %v734_v46, %v730_v43 }
 0x8b1   :  { %v741_v56 = vmul.f32 %v739_v54, %v735_v52 }
 0x90e   :  { %v744_v51 = vpop.permute.xlu0 %743 }
 0x90f   :  { %v746_v53 = vmul.f32 %v744_v51, %v735_v52 }
 0x911   :  { %748 = vrot.lane.b32.xlu1 %v746_v53, %s1462_s4 }
 0x983   :  { %v749_v58 = vpop.permute.xlu1 %748 }
 0x984   :  { %v751_v0 = vadd.f32 %v749_v58, %v741_v56 }
 0x986   :  { %1281 = vtanh.f32 %v751_v0  ;;  %v806_v26 = vrot.slane %v751_v0, 6 }
 0x98c   :  { %v1282_v1 = vpop.eup %1281 }
 0x98d   :  { %754 = vrot.lane.b32.xlu2 %v1282_v1, %s1462_s4 }
 0x9e7   :  { %v755_v2 = vpop.permute.xlu2 %754 }
 0x9e8   :  { %v757_v3 = vmul.f32 %v755_v2, %v735_v52 }
 0x9ea   :  { %v1049_v55 = vrot.slane %v757_v3, 3  ;;  %v1064_v4 = vrot.slane %v757_v3, 4  ;;  %v759_v5 = vrot.slane %v757_v3, 6 }
 0x9ec   :  { %v1076_v6 = vsel %vm1075_vm14, %v1074_v33, %v1049_v55  ;;  %v1086_v7 = vsel %vm1075_vm14, %v1085_v34, %v1064_v4  ;;  %760 = vrot.lane.b32.xlu0 %v759_v5, %s1463_s10 }
 0xa5e   :  { %v761_v8 = vpop.permute.xlu0 %760 }
 0xa5f   :  { %1219 = vmatmul.msk.f32.vlgmr.msra.gmra.mxu2 %vm402_vm6, %v761_v8 }
 0xae2   :  { %v781_v9 = vpop.f32.mrf.mxu2 }
 0xae3   :  { %v784_v10 = vadd.f32 %v781_v9, %v1745_v60 }
 0xae5   :  { %1283 = vtanh.f32 %v784_v10  ;;  %v1220_v12 = vmul.f32 -1.442695, %v784_v10 }
 0xae7   :  { %1285 = vpow2.f32 %v1220_v12 }
 0xaeb   :  { %v1284_v11 = vpop.eup %1283 }
 0xaec   :  { %810 = vrot.lane.b32.xlu1 %v1284_v11, %s1462_s4 }
 0xaed   :  { %v1286_v59 = vpop.eup %1285 }
 0xaee   :  { %v788_v13 = vadd.f32 1.0, %v1286_v59 }
 0xaf0   :  { %1287 = vrcp.f32 %v788_v13  ;;  %v800_v17 = vand.u32 2147483648, %v788_v13  ;;  %vm794_vm0 = vweird.f32 %v788_v13  ;;  %v798_v20 = vand.u32 2147483647, %v788_v13 }
 0xaf2   :  { %v801_v21 = vor.u32 1.1754944e-38, %v800_v17  ;;  %vm799_vm2 = vcmp.eq.f32.partialorder %v798_v20, 8.507059e+37 }
 0xaf6   :  { %v1288_v14 = vpop.eup %1287 }
 0xaf7   :  { %v790_v15 = vmul.f32 %v1288_v14, %v788_v13  ;;  %vm795_vm15 = vweird.f32 %v1288_v14 }
 0xaf8   :  { %vm796_vm1 = vmor %vm794_vm0, %vm795_vm15  ;;  %vm1081_vm15 = vcmask 1045504  }
 0xaf9   :  { %v791_v16 = vsub.f32 1.0, %v790_v15 }
 0xafb   :  { %v792_v18 = vmul.f32 %v1288_v14, %v791_v16 }
 0xafd   :  { %v793_v19 = vadd.f32 %v1288_v14, %v792_v18 }
 0xaff   :  { %v797_v60 = vsel %vm796_vm1, %v1288_v14, %v793_v19 }
 0xb00   :  { %v802_v23 = vsel %vm799_vm2, %v801_v21, %v797_v60 }
 0xb01   :  { %v808_v27 = vmul.f32 %v806_v26, %v802_v23 }
 0xb5e   :  { %v811_v22 = vpop.permute.xlu1 %810 }
 0xb5f   :  { %v813_v25 = vmul.f32 %v811_v22, %v802_v23 }
 0xb61   :  { %815 = vrot.lane.b32.xlu2 %v813_v25, %s1462_s4 }
 0xbbb   :  { %v816_v28 = vpop.permute.xlu2 %815 }
 0xbbc   :  { %v818_v29 = vadd.f32 %v816_v28, %v808_v27 }
 0xbbe   :  { %1289 = vtanh.f32 %v818_v29  ;;  %v875_v54 = vrot.slane %v818_v29, 6 }
 0xbc4   :  { %v1290_v30 = vpop.eup %1289 }
 0xbc5   :  { %821 = vrot.lane.b32.xlu0 %v1290_v30, %s1462_s4 }
 0xc37   :  { %v822_v31 = vpop.permute.xlu0 %821 }
 0xc38   :  { %v824_v32 = vmul.f32 %v822_v31, %v802_v23 }
 0xc3a   :  { %v1051_v33 = vrot.slane %v824_v32, 4  ;;  %v1066_v34 = vrot.slane %v824_v32, 5  ;;  %826 = vrot.lane.b32.xlu1 %v824_v32, %s1463_s10 }
 0xc3c   :  { %v1087_v35 = vsel %vm1077_vm3, %v1086_v7, %v1066_v34  ;;  %v1078_v36 = vsel %vm1077_vm3, %v1076_v6, %v1051_v33 }
 0xcac   :  { %v827_v37 = vpop.permute.xlu1 %826 }
 0xcad   :  { %1221 = vmatmul.msk.f32.vlgmr.msra.gmra.mxu3 %vm402_vm6, %v827_v37 }
 0xd30   :  { %v847_v38 = vpop.f32.mrf.mxu3 }
 0xd31   :  { %v851_v39 = vrot.slane %v847_v38, 6 }
 0xd33   :  { %v853_v40 = vadd.f32 %v851_v39, %v1747_v61 }
 0xd35   :  { %1291 = vtanh.f32 %v853_v40  ;;  %v1222_v41 = vmul.f32 -1.442695, %v853_v40 }
 0xd37   :  { %1293 = vpow2.f32 %v1222_v41 }
 0xd3b   :  { %v1292_v24 = vpop.eup %1291 }
 0xd3c   :  { %879 = vrot.lane.b32.xlu2 %v1292_v24, %s1462_s4 }
 0xd3d   :  { %v1294_v42 = vpop.eup %1293 }
 0xd3e   :  { %v857_v44 = vadd.f32 1.0, %v1294_v42 }
 0xd40   :  { %1295 = vrcp.f32 %v857_v44  ;;  %v869_v57 = vand.u32 2147483648, %v857_v44  ;;  %vm863_vm5 = vweird.f32 %v857_v44  ;;  %v867_v43 = vand.u32 2147483647, %v857_v44 }
 0xd42   :  { %v870_v46 = vor.u32 1.1754944e-38, %v869_v57  ;;  %vm868_vm9 = vcmp.eq.f32.partialorder %v867_v43, 8.507059e+37 }
 0xd46   :  { %v1296_v45 = vpop.eup %1295 }
 0xd47   :  { %v859_v47 = vmul.f32 %v1296_v45, %v857_v44  ;;  %vm864_vm4 = vweird.f32 %v1296_v45 }
 0xd48   :  { %vm865_vm7 = vmor %vm863_vm5, %vm864_vm4 }
 0xd49   :  { %v860_v48 = vsub.f32 1.0, %v859_v47 }
 0xd4b   :  { %v861_v49 = vmul.f32 %v1296_v45, %v860_v48 }
 0xd4d   :  { %v862_v50 = vadd.f32 %v1296_v45, %v861_v49 }
 0xd4f   :  { %v866_v61 = vsel %vm865_vm7, %v1296_v45, %v862_v50 }
 0xd50   :  { %v871_v52 = vsel %vm868_vm9, %v870_v46, %v866_v61 }
 0xd51   :  { %v877_v56 = vmul.f32 %v875_v54, %v871_v52 }
 0xd96   :  { %v880_v51 = vpop.permute.xlu2 %879 }
 0xd97   :  { %v882_v53 = vmul.f32 %v880_v51, %v871_v52 }
 0xd99   :  { %884 = vrot.lane.b32.xlu0 %v882_v53, %s1462_s4 }
 0xe0b   :  { %v885_v58 = vpop.permute.xlu0 %884 }
 0xe0c   :  { %v887_v0 = vadd.f32 %v885_v58, %v877_v56 }
 0xe0e   :  { %1297 = vtanh.f32 %v887_v0  ;;  %v945_v26 = vrot.slane %v887_v0, 6 }
 0xe14   :  { %v1298_v1 = vpop.eup %1297 }
 0xe15   :  { %890 = vrot.lane.b32.xlu1 %v1298_v1, %s1462_s4 }
 0xe87   :  { %v891_v2 = vpop.permute.xlu1 %890 }
 0xe88   :  { %v893_v3 = vmul.f32 %v891_v2, %v871_v52 }
 0xe8a   :  { %v1053_v55 = vrot.slane %v893_v3, 5  ;;  %v1068_v4 = vrot.slane %v893_v3, 6  ;;  %v895_v5 = vrot.slane %v893_v3, 2 }
 0xe8c   :  { %896 = vrot.lane.b32.xlu2 %v895_v5, %s1463_s10  ;;  %v1088_v6 = vsel %vm1079_vm10, %v1087_v35, %v1068_v4  ;;  %v1080_v7 = vsel %vm1079_vm10, %v1078_v36, %v1053_v55 }
 0xee6   :  { %v897_v8 = vpop.permute.xlu2 %896 }
 0xee7   :  { %1223 = vmatmul.msk.f32.vlgmr.msra.gmra.mxu0 %vm402_vm6, %v897_v8  ;;  %v1092_v8 = vld [vmem:[%s1853_s8 + $0x8] sm:$0xff] }
 0xf64   :  { %v917_v9 = vpop.f32.mrf.mxu0 }
 0xf65   :  { %v921_v10 = vrot.slane %v917_v9, 4  ;;  %v1091_v9 = vld [vmem:[%s1853_s8] sm:$0xff] }
 0xf67   :  { %v923_v11 = vadd.f32 %v921_v10, %v1753_v62 }
 0xf69   :  { %1299 = vtanh.f32 %v923_v11  ;;  %v1224_v59 = vmul.f32 -1.442695, %v923_v11 }
 0xf6b   :  { %1301 = vpow2.f32 %v1224_v59 }
 0xf6f   :  { %v1300_v12 = vpop.eup %1299 }
 0xf70   :  { %949 = vrot.lane.b32.xlu0 %v1300_v12, %s1462_s4 }
 0xf71   :  { %v1302_v13 = vpop.eup %1301 }
 0xf72   :  { %v927_v14 = vadd.f32 1.0, %v1302_v13  ;;  %v1250_v13 = vld [vmem:[#allocation7] ss:$0 sm:$0xff] }
 0xf74   :  { %1303 = vrcp.f32 %v927_v14  ;;  %v939_v20 = vand.u32 2147483648, %v927_v14  ;;  %vm933_vm12 = vweird.f32 %v927_v14  ;;  %v937_v60 = vand.u32 2147483647, %v927_v14 }
 0xf76   :  { %v940_v21 = vor.u32 1.1754944e-38, %v939_v20  ;;  %vm938_vm14 = vcmp.eq.f32.partialorder %v937_v60, 8.507059e+37 }
 0xf7a   :  { %v1304_v15 = vpop.eup %1303 }
 0xf7b   :  { %v929_v16 = vmul.f32 %v1304_v15, %v927_v14  ;;  %vm934_vm11 = vweird.f32 %v1304_v15 }
 0xf7c   :  { %vm935_vm13 = vmor %vm933_vm12, %vm934_vm11 }
 0xf7d   :  { %v930_v18 = vsub.f32 1.0, %v929_v16 }
 0xf7f   :  { %v931_v19 = vmul.f32 %v1304_v15, %v930_v18 }
 0xf81   :  { %v932_v17 = vadd.f32 %v1304_v15, %v931_v19 }
 0xf83   :  { %v936_v62 = vsel %vm935_vm13, %v1304_v15, %v932_v17 }
 0xf84   :  { %v941_v23 = vsel %vm938_vm14, %v940_v21, %v936_v62 }
 0xf85   :  { %v947_v27 = vmul.f32 %v945_v26, %v941_v23 }
 0xfe2   :  { %v950_v22 = vpop.permute.xlu0 %949 }
 0xfe3   :  { %v952_v25 = vmul.f32 %v950_v22, %v941_v23 }
 0xfe5   :  { %954 = vrot.lane.b32.xlu1 %v952_v25, %s1462_s4 }
0x1057   :  { %v955_v28 = vpop.permute.xlu1 %954 }
0x1058   :  { %v957_v29 = vadd.f32 %v955_v28, %v947_v27 }
0x105a   :  { %1305 = vtanh.f32 %v957_v29  ;;  %v1015_v54 = vrot.slane %v957_v29, 6 }
0x1060   :  { %v1306_v30 = vpop.eup %1305 }
0x1061   :  { %960 = vrot.lane.b32.xlu2 %v1306_v30, %s1462_s4 }
0x10bb   :  { %v961_v31 = vpop.permute.xlu2 %960 }
0x10bc   :  { %v963_v32 = vmul.f32 %v961_v31, %v941_v23 }
0x10be   :  { %v1055_v33 = vrot.slane %v963_v32, 6  ;;  %v1070_v34 = vrot.slane %v963_v32, 7  ;;  %v965_v35 = vrot.slane %v963_v32, 4 }
0x10c0   :  { %966 = vrot.lane.b32.xlu0 %v965_v35, %s1463_s10  ;;  %v1089_v36 = vsel %vm1081_vm15, %v1088_v6, %v1070_v34  ;;  %v1082_v37 = vsel %vm1081_vm15, %v1080_v7, %v1055_v33  ;;  %v1094_v6 = vld [vmem:[%s1853_s8 + $0x18] sm:$0xff]  ;;  %v1093_v7 = vld [vmem:[%s1853_s8 + $0x10] sm:$0xff]  ;;  %s1466_s8 = smov [#allocation12]  }
0x10c1   :  { %1121 = vmatpush.msrb.mxu2 %v1094_v6  ;;  %s1163_s18 = sshll.u32 %s1466_s8, 4  ;;  %s1164_s18 = int_to_ptr.vmem [resolvable:$true] %s1163_s18 }
0x10c3   :  { %1122 = vmatpush.msrb.mxu2 %v1093_v7 }
0x10c5   :  { %1123 = vmatpush.msrb.mxu2 %v1092_v8 }
0x10c7   :  { %1124 = vmatpush.msrb.mxu2 %v1091_v9 }
0x1132   :  { %v967_v38 = vpop.permute.xlu0 %966 }
0x1133   :  { %1225 = vmatmul.msk.f32.vlgmr.msrb.gmra.mxu1 %vm402_vm6, %v967_v38 }
0x11b0   :  { %v987_v39 = vpop.f32.mrf.mxu1 }
0x11b1   :  { %v991_v40 = vrot.slane %v987_v39, 2 }
0x11b3   :  { %v993_v24 = vadd.f32 %v991_v40, %v1757_v63 }
0x11b5   :  { %1307 = vtanh.f32 %v993_v24  ;;  %v1226_v42 = vmul.f32 -1.442695, %v993_v24 }
0x11b7   :  { %1309 = vpow2.f32 %v1226_v42 }
0x11bb   :  { %v1308_v41 = vpop.eup %1307 }
0x11bc   :  { %1019 = vrot.lane.b32.xlu1 %v1308_v41, %s1462_s4 }
0x11bd   :  { %v1310_v44 = vpop.eup %1309 }
0x11be   :  { %v997_v45 = vadd.f32 1.0, %v1310_v44 }
0x11c0   :  { %1311 = vrcp.f32 %v997_v45  ;;  %v1009_v43 = vand.u32 2147483648, %v997_v45  ;;  %vm1003_vm1 = vweird.f32 %v997_v45  ;;  %v1007_v61 = vand.u32 2147483647, %v997_v45 }
0x11c2   :  { %v1010_v46 = vor.u32 1.1754944e-38, %v1009_v43  ;;  %vm1008_vm3 = vcmp.eq.f32.partialorder %v1007_v61, 8.507059e+37 }
0x11c6   :  { %v1312_v47 = vpop.eup %1311 }
0x11c7   :  { %v999_v48 = vmul.f32 %v1312_v47, %v997_v45  ;;  %vm1004_vm0 = vweird.f32 %v1312_v47 }
0x11c8   :  { %vm1005_vm2 = vmor %vm1003_vm1, %vm1004_vm0 }
0x11c9   :  { %v1000_v49 = vsub.f32 1.0, %v999_v48 }
0x11cb   :  { %v1001_v50 = vmul.f32 %v1312_v47, %v1000_v49 }
0x11cd   :  { %v1002_v57 = vadd.f32 %v1312_v47, %v1001_v50 }
0x11cf   :  { %v1006_v63 = vsel %vm1005_vm2, %v1312_v47, %v1002_v57 }
0x11d0   :  { %v1011_v52 = vsel %vm1008_vm3, %v1010_v46, %v1006_v63 }
0x11d1   :  { %v1017_v56 = vmul.f32 %v1015_v54, %v1011_v52 }
0x122e   :  { %v1020_v51 = vpop.permute.xlu1 %1019 }
0x122f   :  { %v1022_v53 = vmul.f32 %v1020_v51, %v1011_v52 }
0x1231   :  { %1024 = vrot.lane.b32.xlu2 %v1022_v53, %s1462_s4 }
0x128b   :  { %v1025_v58 = vpop.permute.xlu2 %1024 }
0x128c   :  { %v1027_v0 = vadd.f32 %v1025_v58, %v1017_v56 }
0x128e   :  { %1313 = vtanh.f32 %v1027_v0 }
0x1294   :  { %v1314_v1 = vpop.eup %1313 }
0x1295   :  { %1030 = vrot.lane.b32.xlu0 %v1314_v1, %s1462_s4  ;;  %s1468_s4 = smov 128  }
0x1307   :  { %v1031_v2 = vpop.permute.xlu0 %1030 }
0x1308   :  { %v1033_v3 = vmul.f32 %v1031_v2, %v1011_v52 }
0x130a   :  { %v1057_v55 = vrot.slane %v1033_v3, 7  ;;  %1035 = vrot.lane.b32.xlu0 %v1033_v3, %s1463_s10  ;;  %v1090_v4 = vsel %vm216_vm8, %v1089_v36, %v1033_v3 }
0x130b   :  { %1103 = vrot.lane.b32.xlu2 %v1090_v4, %s1463_s10 }
0x130c   :  { %v1083_v5 = vsel %vm216_vm8, %v1082_v37, %v1057_v55  ;;  %vm1038_vm8 = vcmask 261126  }
0x130d   :  { %1101 = vrot.lane.b32.xlu1 %v1083_v5, %s1463_s10 }
0x1315   :  { %1041 = vrot.lane.b32.xlu1 %v1027_v0, %s1464_s3 }
0x1365   :  { %v1104_v12 = vpop.permute.xlu2 %1103 }
0x137c   :  { %v1036_v10 = vpop.permute.xlu0 %1035 }
0x137d   :  { %1039 = vst.msk [vmem:[#allocation10 - $0x6] sm:$0xc0] %vm1038_vm8, %v1036_v10 }
0x137e   :  { %1157 = dma.vmem_to_hbm [thread:$0]  %s1153_s30, 32, %s1155_s17, [#allocation11]  }
0x137f   :  { %v1102_v11 = vpop.permute.xlu1 %1101 }
0x1380   :  { %1227 = vmatmul.msk.f32.vlgmr.msrb.gmra.mxu2 %vm402_vm6, %v1102_v11 }
0x1387   :  { %v1042_v59 = vpop.permute.xlu1 %1041 }
0x1388   :  { %1044 = vst.msk [vmem:[#allocation12 - $0x6] sm:$0xc0] %vm1038_vm8, %v1042_v59  ;;  %1228 = vmatmul.msk.f32.gmra.mxu2 %vm402_vm6, %v1104_v12 }
0x1389   :  { %1168 = dma.vmem_to_hbm [thread:$0]  %s1164_s18, 32, %s1166_s21, [#allocation11]  }
0x1403   :  { %v1126_v14 = vpop.f32.mrf.mxu2 }
0x1404   :  { %v1127_v15 = vadd.f32 %v1250_v13, %v1126_v14 }
0x1406   :  { %1132 = vst [vmem:[#allocation9] sm:$0xff] %v1127_v15 }
0x140b   :  { %v1129_v16 = vpop.f32.mrf.mxu2 }
0x140c   :  { %v1130_v18 = vadd.f32 %v1250_v13, %v1129_v16 }
0x140e   :  { %1133 = vst [vmem:[#allocation9 + $0x8] sm:$0xff] %v1130_v18 }
0x140f   :  { %1146 = dma.vmem_to_hbm [thread:$0]  %s1139_s23, 256, %s1141_s24, [#allocation4], %s1468_s4, %s1468_s4, %s1469_s14  }
0x1410   :  { %1453 = dma.done.wait [#allocation4], 256  }
0x1411   :  { %1454 = vsyncadd [#allocation4], 4294967040 }
0x1412   :  { %1455 = dma.done.wait [#allocation11], 64  }
0x1413   :  { %1456 = vsyncadd [#allocation11], 4294967232 }
0x1414   :  { %1181 = vsyncpa [#allocation3], 1 }
0x1415   :  { %1182 = vsyncpa [#allocation8], 1 }
0x1416   :  { %1183 = vsyncpa [#allocation4], 1 }
0x1417   :  { %1184 = vsyncpa [#allocation11], 1 }
0x1418   :  { %1185 = vsyncpa [#allocation5], 1 }

</bundles_post_ra>
